<compile_context>
chip_gen: v7x
topology: tpu7x:2x2x1
jax: 0.10.0
libtpu: 0.0.40
codegen_flags: <defaults>
</compile_context>

<pallas_src>
import functools

import jax
import jax.numpy as jnp
import numpy as np
from jax.experimental import pallas as pl
from jax.experimental.pallas import tpu as pltpu

LANE = 128  # TPU lane width; dense output padded to this so the final store is unmasked.


# -----------------------------------------------------------------------------
# Pallas kernel: full 2-layer LSTM recurrence + dense + ReLU
# -----------------------------------------------------------------------------
def oil_kernel(x_ref,        # (T*Bp, F)    time-major input, flattened over (T, Bp)
               wih0_ref,     # (F, 4U)      layer-0 input weights (transposed)
               b0_ref,       # (1, 4U)      layer-0 combined bias (b_ih + b_hh)
               whh0_ref,     # (U, 4U)      layer-0 hidden weights (transposed)
               wih1_ref,     # (U, 4U)      layer-1 input weights (transposed)
               b1_ref,       # (1, 4U)      layer-1 combined bias
               whh1_ref,     # (U, 4U)      layer-1 hidden weights (transposed)
               wdp_ref,      # (U, LANE)    dense weights, zero-padded to 128 lanes
               bdp_ref,      # (1, LANE)
               out_ref,      # (T*Bp, LANE) lane-dense output (wrapper slices [:, :3])
               h0_all,       # VMEM scratch (T*Bp, U): per-step layer-0 hidden states
               h1_all,       # VMEM scratch (T*Bp, U): per-step layer-1 hidden states
               *, T, Bp, U):
    whh0 = whh0_ref[...]
    whh1 = whh1_ref[...]

    # Hoisted layer-0 input projection for ALL timesteps: one batched matmul
    # (bias folded in here, never inside the loop).
    xproj = (jnp.dot(x_ref[...], wih0_ref[...], preferred_element_type=jnp.float32)
             + b0_ref[...])                                            # (T*Bp, 4U)

    # Single-transcendental gate activation (hoisted per-lane constants):
    #   i/f/o lanes: sigmoid(g);  g-lanes: tanh(g) = 2*sigmoid(2*g) - 1.
    # PyTorch gate order along the 4U lanes is (i, f, g, o).
    lane_idx = jax.lax.broadcasted_iota(jnp.int32, (Bp, 4 * U), 1)
    is_g = jnp.logical_and(lane_idx >= 2 * U, lane_idx < 3 * U)
    pre_scale = jnp.where(is_g, 2.0, 1.0)    # scale g-lanes by 2 before sigmoid
    post_mul = pre_scale                      # 2 for g-lanes, 1 otherwise
    post_add = jnp.where(is_g, -1.0, 0.0)     # -1 for g-lanes, 0 otherwise

    def activate(gates):
        a = post_mul * jax.nn.sigmoid(pre_scale * gates) + post_add
        return (a[:, 0 * U:1 * U], a[:, 1 * U:2 * U],
                a[:, 2 * U:3 * U], a[:, 3 * U:4 * U])

    # ---- layer 0 recurrence: its own chain, one (Bp,U)@(U,4U) matmul per step ----
    h = jnp.zeros((Bp, U), jnp.float32)
    c = jnp.zeros((Bp, U), jnp.float32)
    for t in range(T):                                     # T is small & static: unroll
        g = xproj[t * Bp:(t + 1) * Bp, :] + jnp.dot(
            h, whh0, preferred_element_type=jnp.float32)
        i, f, gg, o = activate(g)
        c = f * c + i * gg
        h = o * jnp.tanh(c)
        h0_all[t * Bp:(t + 1) * Bp, :] = h                 # sublane-aligned scratch store

    # Hoisted layer-1 input projection for ALL timesteps (removes the 12 in-loop
    # wih1 matmuls and the b1 adds from the dependency chain).
    g1_all = (jnp.dot(h0_all[...], wih1_ref[...], preferred_element_type=jnp.float32)
              + b1_ref[...])                                           # (T*Bp, 4U)

    # ---- layer 1 recurrence ----
    h = jnp.zeros((Bp, U), jnp.float32)
    c = jnp.zeros((Bp, U), jnp.float32)
    for t in range(T):
        g = g1_all[t * Bp:(t + 1) * Bp, :] + jnp.dot(
            h, whh1, preferred_element_type=jnp.float32)
        i, f, gg, o = activate(g)
        c = f * c + i * gg
        h = o * jnp.tanh(c)
        h1_all[t * Bp:(t + 1) * Bp, :] = h

    # Deferred dense + ReLU: one (T*Bp,U)@(U,LANE) matmul, single lane-dense store.
    y = (jnp.dot(h1_all[...], wdp_ref[...], preferred_element_type=jnp.float32)
         + bdp_ref[...])
    out_ref[...] = jnp.maximum(y, 0.0)


# -----------------------------------------------------------------------------
# Wrapper
# -----------------------------------------------------------------------------
def oil_forward(x, params):
    """x: (B, T, 3) float32 (batch_first, like PyTorch). Returns (B, T, 3)."""
    B, T, F = x.shape
    U = params["whh0T"].shape[0]
    out_dim = params["wdT"].shape[1]

    # Pad batch to a full sublane group (multiple of 8) so every per-step slice
    # is a whole aligned (8,128) vreg.
    Bp = max(8, -(-B // 8) * 8)

    wdT_pad = jnp.zeros((U, LANE), jnp.float32).at[:, :out_dim].set(params["wdT"])
    bd_pad = jnp.zeros((1, LANE), jnp.float32).at[:, :out_dim].set(params["bd"])

    x_pad = jnp.zeros((Bp, T, F), jnp.float32).at[:B].set(x)
    x_flat = jnp.transpose(x_pad, (1, 0, 2)).reshape(T * Bp, F)   # time-major, flat

    args = (x_flat, params["wih0T"], params["b0"], params["whh0T"],
            params["wih1T"], params["b1"], params["whh1T"], wdT_pad, bd_pad)

    kernel = functools.partial(oil_kernel, T=T, Bp=Bp, U=U)

    def full_spec(shape):
        n = len(shape)
        return pl.BlockSpec(shape, lambda i, n=n: (0,) * n)

    # Single latency-bound sequence block: grid=(1,); whole working set (~40 KB)
    # lives in VMEM on every generation.  For large-batch serving one would add a
    # leading "parallel" grid axis over batch chunks (second v7x TensorCore); at
    # B=2 the serial T=12 chain is irreducible.
    out = pl.pallas_call(
        kernel,
        out_shape=jax.ShapeDtypeStruct((T * Bp, LANE), jnp.float32),
        grid=(1,),
        in_specs=[full_spec(a.shape) for a in args],
        out_specs=full_spec((T * Bp, LANE)),
        scratch_shapes=[pltpu.VMEM((T * Bp, U), jnp.float32),
                        pltpu.VMEM((T * Bp, U), jnp.float32)],
        compiler_params=pltpu.CompilerParams(
            dimension_semantics=("arbitrary",)),
    )(*args)

    # Slice away lane + batch padding and return batch-first (B, T, 3).
    y = out[:, :out_dim].reshape(T, Bp, out_dim)[:, :B]
    return jnp.transpose(y, (1, 0, 2))


# -----------------------------------------------------------------------------
# Deterministic parameter initialization (PyTorch-style uniform(-k, k))
# -----------------------------------------------------------------------------
def init_params(key, input_size=3, units=32, out_size=3):
    k = 1.0 / np.sqrt(units)
    keys = jax.random.split(key, 12)

    def u(kk, shape):
        return jax.random.uniform(kk, shape, jnp.float32, -k, k)

    w_ih0 = u(keys[0], (4 * units, input_size))
    w_hh0 = u(keys[1], (4 * units, units))
    b_ih0 = u(keys[2], (4 * units,))
    b_hh0 = u(keys[3], (4 * units,))
    w_ih1 = u(keys[4], (4 * units, units))
    w_hh1 = u(keys[5], (4 * units, units))
    b_ih1 = u(keys[6], (4 * units,))
    b_hh1 = u(keys[7], (4 * units,))
    kd = 1.0 / np.sqrt(units)
    w_d = jax.random.uniform(keys[8], (out_size, units), jnp.float32, -kd, kd)
    b_d = jax.random.uniform(keys[9], (out_size,), jnp.float32, -kd, kd)

    return {
        "wih0T": w_ih0.T, "whh0T": w_hh0.T, "b0": (b_ih0 + b_hh0)[None, :],
        "wih1T": w_ih1.T, "whh1T": w_hh1.T, "b1": (b_ih1 + b_hh1)[None, :],
        "wdT": w_d.T, "bd": b_d[None, :],
    }


# -----------------------------------------------------------------------------
# Pure-JAX reference (same math) for verification
# -----------------------------------------------------------------------------
def oil_reference(x, params):
    B, T, F = x.shape
    U = params["whh0T"].shape[0]

    def cell(x_t, h, c, wih, whh, b):
        g = x_t @ wih + h @ whh + b
        i = jax.nn.sigmoid(g[:, 0 * U:1 * U])
        f = jax.nn.sigmoid(g[:, 1 * U:2 * U])
        gg = jnp.tanh(g[:, 2 * U:3 * U])
        o = jax.nn.sigmoid(g[:, 3 * U:4 * U])
        c_new = f * c + i * gg
        return o * jnp.tanh(c_new), c_new

    def step(carry, x_t):
        h0, c0, h1, c1 = carry
        h0, c0 = cell(x_t, h0, c0, params["wih0T"], params["whh0T"], params["b0"])
        h1, c1 = cell(h0, h1, c1, params["wih1T"], params["whh1T"], params["b1"])
        y = jnp.maximum(h1 @ params["wdT"] + params["bd"], 0.0)
        return (h0, c0, h1, c1), y

    zeros = jnp.zeros((B, U), jnp.float32)
    _, ys = jax.lax.scan(step, (zeros,) * 4, jnp.transpose(x, (1, 0, 2)))
    return jnp.transpose(ys, (1, 0, 2))


if __name__ == "__main__":
    key = jax.random.PRNGKey(0)
    kp, kx = jax.random.split(key)

    B, T, F, U = 2, 12, 3, 32   # timesteps=12, units=32, input features=3
    params = init_params(kp, input_size=F, units=U, out_size=3)
    x = jax.random.normal(kx, (B, T, F), jnp.float32)

    out = oil_forward(x, params)
    out = jax.block_until_ready(out)

    ref = jax.block_until_ready(oil_reference(x, params))
    np.testing.assert_allclose(np.asarray(out), np.asarray(ref), rtol=1e-5, atol=1e-5)

    assert out.shape == (B, T, 3)
    print("KERNEL_OK")
</pallas_src>

<mosaic_0001>
module attributes {stable_mosaic.version = 11 : i64} {
  func.func @oil_kernel(%arg0: i32, %arg1: memref<96x3xf32, #tpu.memory_space<vmem>>, %arg2: memref<3x128xf32, #tpu.memory_space<vmem>>, %arg3: memref<1x128xf32, #tpu.memory_space<vmem>>, %arg4: memref<32x128xf32, #tpu.memory_space<vmem>>, %arg5: memref<32x128xf32, #tpu.memory_space<vmem>>, %arg6: memref<1x128xf32, #tpu.memory_space<vmem>>, %arg7: memref<32x128xf32, #tpu.memory_space<vmem>>, %arg8: memref<32x128xf32, #tpu.memory_space<vmem>>, %arg9: memref<1x128xf32, #tpu.memory_space<vmem>>, %arg10: memref<96x128xf32, #tpu.memory_space<vmem>>, %arg11: memref<96x32xf32, #tpu.memory_space<vmem>>, %arg12: memref<96x32xf32, #tpu.memory_space<vmem>>) attributes {dimension_semantics = [#tpu.dimension_semantics<arbitrary>], iteration_bounds = array<i64: 1>, scalar_prefetch = 0 : i64, scratch_operands = 2 : i64, tpu.core_type = #tpu.core_type<tc>, window_params = [{pipeline_mode = #tpu.pipeline_mode<synchronous>, transform_indices = @transform_0, window_bounds = array<i64: 96, 3>}, {pipeline_mode = #tpu.pipeline_mode<synchronous>, transform_indices = @transform_1, window_bounds = array<i64: 3, 128>}, {pipeline_mode = #tpu.pipeline_mode<synchronous>, transform_indices = @transform_2, window_bounds = array<i64: 1, 128>}, {pipeline_mode = #tpu.pipeline_mode<synchronous>, transform_indices = @transform_3, window_bounds = array<i64: 32, 128>}, {pipeline_mode = #tpu.pipeline_mode<synchronous>, transform_indices = @transform_4, window_bounds = array<i64: 32, 128>}, {pipeline_mode = #tpu.pipeline_mode<synchronous>, transform_indices = @transform_5, window_bounds = array<i64: 1, 128>}, {pipeline_mode = #tpu.pipeline_mode<synchronous>, transform_indices = @transform_6, window_bounds = array<i64: 32, 128>}, {pipeline_mode = #tpu.pipeline_mode<synchronous>, transform_indices = @transform_7, window_bounds = array<i64: 32, 128>}, {pipeline_mode = #tpu.pipeline_mode<synchronous>, transform_indices = @transform_8, window_bounds = array<i64: 1, 128>}, {pipeline_mode = #tpu.pipeline_mode<synchronous>, transform_indices = @transform_9, window_bounds = array<i64: 96, 128>}]} {
    %c0 = arith.constant 0 : index
    %c0_0 = arith.constant 0 : index
    %0 = vector.load %arg4[%c0, %c0_0] : memref<32x128xf32, #tpu.memory_space<vmem>>, vector<32x128xf32>
    %c0_1 = arith.constant 0 : index
    %c0_2 = arith.constant 0 : index
    %1 = vector.load %arg7[%c0_1, %c0_2] : memref<32x128xf32, #tpu.memory_space<vmem>>, vector<32x128xf32>
    %c0_3 = arith.constant 0 : index
    %c0_4 = arith.constant 0 : index
    %2 = vector.load %arg1[%c0_3, %c0_4] : memref<96x3xf32, #tpu.memory_space<vmem>>, vector<96x3xf32>
    %c0_5 = arith.constant 0 : index
    %c0_6 = arith.constant 0 : index
    %3 = vector.load %arg2[%c0_5, %c0_6] : memref<3x128xf32, #tpu.memory_space<vmem>>, vector<3x128xf32>
    %cst = arith.constant dense<0.000000e+00> : vector<96x128xf32>
    %4 = tpu.matmul %2, %3, %cst {dimension_numbers = #tpu.dot_dimension_numbers<[1], [0], [0], [1], [0, 0, 1, 1], [], []>} : vector<96x3xf32>, vector<3x128xf32>, vector<96x128xf32> -> vector<96x128xf32>
    %c0_7 = arith.constant 0 : index
    %c0_8 = arith.constant 0 : index
    %5 = vector.load %arg3[%c0_7, %c0_8] : memref<1x128xf32, #tpu.memory_space<vmem>>, vector<1x128xf32>
    %6 = vector.broadcast %5 : vector<1x128xf32> to vector<96x128xf32>
    %7 = arith.addf %4, %6 : vector<96x128xf32>
    %8 = tpu.iota {dimensions = array<i32: 1>} : vector<8x128xi32>
    %c64_i32 = arith.constant 64 : i32
    %9 = vector.broadcast %c64_i32 : i32 to vector<8x128xi32>
    %10 = arith.cmpi sge, %8, %9 : vector<8x128xi32>
    %c96_i32 = arith.constant 96 : i32
    %11 = vector.broadcast %c96_i32 : i32 to vector<8x128xi32>
    %12 = arith.cmpi slt, %8, %11 : vector<8x128xi32>
    %13 = arith.andi %10, %12 : vector<8x128xi1>
    %cst_9 = arith.constant 2.000000e+00 : f32
    %cst_10 = arith.constant 1.000000e+00 : f32
    %14 = vector.broadcast %cst_9 : f32 to vector<8x128xf32>
    %15 = vector.broadcast %cst_10 : f32 to vector<8x128xf32>
    %16 = arith.select %13, %14, %15 : vector<8x128xi1>, vector<8x128xf32>
    %cst_11 = arith.constant -1.000000e+00 : f32
    %cst_12 = arith.constant 0.000000e+00 : f32
    %17 = vector.broadcast %cst_11 : f32 to vector<8x128xf32>
    %18 = vector.broadcast %cst_12 : f32 to vector<8x128xf32>
    %19 = arith.select %13, %17, %18 : vector<8x128xi1>, vector<8x128xf32>
    %cst_13 = arith.constant 0.000000e+00 : f32
    %20 = vector.broadcast %cst_13 : f32 to vector<8x32xf32>
    %cst_14 = arith.constant 0.000000e+00 : f32
    %21 = vector.broadcast %cst_14 : f32 to vector<8x32xf32>
    %22 = vector.extract_strided_slice %7 {offsets = [0, 0], sizes = [8, 128], strides = [1, 1]} : vector<96x128xf32> to vector<8x128xf32>
    %cst_15 = arith.constant dense<0.000000e+00> : vector<8x128xf32>
    %23 = tpu.matmul %20, %0, %cst_15 {dimension_numbers = #tpu.dot_dimension_numbers<[1], [0], [0], [1], [0, 0, 1, 1], [], []>} : vector<8x32xf32>, vector<32x128xf32>, vector<8x128xf32> -> vector<8x128xf32>
    %24 = arith.addf %22, %23 : vector<8x128xf32>
    %25 = arith.mulf %16, %24 : vector<8x128xf32>
    %26 = arith.negf %25 : vector<8x128xf32>
    %27 = math.exp %26 : vector<8x128xf32>
    %cst_16 = arith.constant 1.000000e+00 : f32
    %28 = vector.broadcast %cst_16 : f32 to vector<8x128xf32>
    %29 = arith.addf %28, %27 : vector<8x128xf32>
    %30 = arith.divf %28, %29 : vector<8x128xf32>
    %31 = arith.mulf %16, %30 : vector<8x128xf32>
    %32 = arith.addf %31, %19 : vector<8x128xf32>
    %33 = vector.extract_strided_slice %32 {offsets = [0, 0], sizes = [8, 32], strides = [1, 1]} : vector<8x128xf32> to vector<8x32xf32>
    %34 = vector.extract_strided_slice %32 {offsets = [0, 32], sizes = [8, 32], strides = [1, 1]} : vector<8x128xf32> to vector<8x32xf32>
    %35 = vector.extract_strided_slice %32 {offsets = [0, 64], sizes = [8, 32], strides = [1, 1]} : vector<8x128xf32> to vector<8x32xf32>
    %36 = vector.extract_strided_slice %32 {offsets = [0, 96], sizes = [8, 32], strides = [1, 1]} : vector<8x128xf32> to vector<8x32xf32>
    %37 = arith.mulf %34, %21 : vector<8x32xf32>
    %38 = arith.mulf %33, %35 : vector<8x32xf32>
    %39 = arith.addf %37, %38 : vector<8x32xf32>
    %40 = math.tanh %39 : vector<8x32xf32>
    %41 = arith.mulf %36, %40 : vector<8x32xf32>
    %c0_17 = arith.constant 0 : index
    %c0_18 = arith.constant 0 : index
    %42 = vector.load %arg11[%c0_17, %c0_18] : memref<96x32xf32, #tpu.memory_space<vmem>>, vector<8x32xf32>
    tpu.vector_store %arg11[%c0_17, %c0_18], %41 {strides = array<i32>} : memref<96x32xf32, #tpu.memory_space<vmem>>, vector<8x32xf32>,
    %43 = vector.extract_strided_slice %7 {offsets = [8, 0], sizes = [8, 128], strides = [1, 1]} : vector<96x128xf32> to vector<8x128xf32>
    %cst_19 = arith.constant dense<0.000000e+00> : vector<8x128xf32>
    %44 = tpu.matmul %41, %0, %cst_19 {dimension_numbers = #tpu.dot_dimension_numbers<[1], [0], [0], [1], [0, 0, 1, 1], [], []>} : vector<8x32xf32>, vector<32x128xf32>, vector<8x128xf32> -> vector<8x128xf32>
    %45 = arith.addf %43, %44 : vector<8x128xf32>
    %46 = arith.mulf %16, %45 : vector<8x128xf32>
    %47 = arith.negf %46 : vector<8x128xf32>
    %48 = math.exp %47 : vector<8x128xf32>
    %cst_20 = arith.constant 1.000000e+00 : f32
    %49 = vector.broadcast %cst_20 : f32 to vector<8x128xf32>
    %50 = arith.addf %49, %48 : vector<8x128xf32>
    %51 = arith.divf %49, %50 : vector<8x128xf32>
    %52 = arith.mulf %16, %51 : vector<8x128xf32>
    %53 = arith.addf %52, %19 : vector<8x128xf32>
    %54 = vector.extract_strided_slice %53 {offsets = [0, 0], sizes = [8, 32], strides = [1, 1]} : vector<8x128xf32> to vector<8x32xf32>
    %55 = vector.extract_strided_slice %53 {offsets = [0, 32], sizes = [8, 32], strides = [1, 1]} : vector<8x128xf32> to vector<8x32xf32>
    %56 = vector.extract_strided_slice %53 {offsets = [0, 64], sizes = [8, 32], strides = [1, 1]} : vector<8x128xf32> to vector<8x32xf32>
    %57 = vector.extract_strided_slice %53 {offsets = [0, 96], sizes = [8, 32], strides = [1, 1]} : vector<8x128xf32> to vector<8x32xf32>
    %58 = arith.mulf %55, %39 : vector<8x32xf32>
    %59 = arith.mulf %54, %56 : vector<8x32xf32>
    %60 = arith.addf %58, %59 : vector<8x32xf32>
    %61 = math.tanh %60 : vector<8x32xf32>
    %62 = arith.mulf %57, %61 : vector<8x32xf32>
    %c8 = arith.constant 8 : index
    %c0_21 = arith.constant 0 : index
    %63 = vector.load %arg11[%c8, %c0_21] : memref<96x32xf32, #tpu.memory_space<vmem>>, vector<8x32xf32>
    tpu.vector_store %arg11[%c8, %c0_21], %62 {strides = array<i32>} : memref<96x32xf32, #tpu.memory_space<vmem>>, vector<8x32xf32>,
    %64 = vector.extract_strided_slice %7 {offsets = [16, 0], sizes = [8, 128], strides = [1, 1]} : vector<96x128xf32> to vector<8x128xf32>
    %cst_22 = arith.constant dense<0.000000e+00> : vector<8x128xf32>
    %65 = tpu.matmul %62, %0, %cst_22 {dimension_numbers = #tpu.dot_dimension_numbers<[1], [0], [0], [1], [0, 0, 1, 1], [], []>} : vector<8x32xf32>, vector<32x128xf32>, vector<8x128xf32> -> vector<8x128xf32>
    %66 = arith.addf %64, %65 : vector<8x128xf32>
    %67 = arith.mulf %16, %66 : vector<8x128xf32>
    %68 = arith.negf %67 : vector<8x128xf32>
    %69 = math.exp %68 : vector<8x128xf32>
    %cst_23 = arith.constant 1.000000e+00 : f32
    %70 = vector.broadcast %cst_23 : f32 to vector<8x128xf32>
    %71 = arith.addf %70, %69 : vector<8x128xf32>
    %72 = arith.divf %70, %71 : vector<8x128xf32>
    %73 = arith.mulf %16, %72 : vector<8x128xf32>
    %74 = arith.addf %73, %19 : vector<8x128xf32>
    %75 = vector.extract_strided_slice %74 {offsets = [0, 0], sizes = [8, 32], strides = [1, 1]} : vector<8x128xf32> to vector<8x32xf32>
    %76 = vector.extract_strided_slice %74 {offsets = [0, 32], sizes = [8, 32], strides = [1, 1]} : vector<8x128xf32> to vector<8x32xf32>
    %77 = vector.extract_strided_slice %74 {offsets = [0, 64], sizes = [8, 32], strides = [1, 1]} : vector<8x128xf32> to vector<8x32xf32>
    %78 = vector.extract_strided_slice %74 {offsets = [0, 96], sizes = [8, 32], strides = [1, 1]} : vector<8x128xf32> to vector<8x32xf32>
    %79 = arith.mulf %76, %60 : vector<8x32xf32>
    %80 = arith.mulf %75, %77 : vector<8x32xf32>
    %81 = arith.addf %79, %80 : vector<8x32xf32>
    %82 = math.tanh %81 : vector<8x32xf32>
    %83 = arith.mulf %78, %82 : vector<8x32xf32>
    %c16 = arith.constant 16 : index
    %c0_24 = arith.constant 0 : index
    %84 = vector.load %arg11[%c16, %c0_24] : memref<96x32xf32, #tpu.memory_space<vmem>>, vector<8x32xf32>
    tpu.vector_store %arg11[%c16, %c0_24], %83 {strides = array<i32>} : memref<96x32xf32, #tpu.memory_space<vmem>>, vector<8x32xf32>,
    %85 = vector.extract_strided_slice %7 {offsets = [24, 0], sizes = [8, 128], strides = [1, 1]} : vector<96x128xf32> to vector<8x128xf32>
    %cst_25 = arith.constant dense<0.000000e+00> : vector<8x128xf32>
    %86 = tpu.matmul %83, %0, %cst_25 {dimension_numbers = #tpu.dot_dimension_numbers<[1], [0], [0], [1], [0, 0, 1, 1], [], []>} : vector<8x32xf32>, vector<32x128xf32>, vector<8x128xf32> -> vector<8x128xf32>
    %87 = arith.addf %85, %86 : vector<8x128xf32>
    %88 = arith.mulf %16, %87 : vector<8x128xf32>
    %89 = arith.negf %88 : vector<8x128xf32>
    %90 = math.exp %89 : vector<8x128xf32>
    %cst_26 = arith.constant 1.000000e+00 : f32
    %91 = vector.broadcast %cst_26 : f32 to vector<8x128xf32>
    %92 = arith.addf %91, %90 : vector<8x128xf32>
    %93 = arith.divf %91, %92 : vector<8x128xf32>
    %94 = arith.mulf %16, %93 : vector<8x128xf32>
    %95 = arith.addf %94, %19 : vector<8x128xf32>
    %96 = vector.extract_strided_slice %95 {offsets = [0, 0], sizes = [8, 32], strides = [1, 1]} : vector<8x128xf32> to vector<8x32xf32>
    %97 = vector.extract_strided_slice %95 {offsets = [0, 32], sizes = [8, 32], strides = [1, 1]} : vector<8x128xf32> to vector<8x32xf32>
    %98 = vector.extract_strided_slice %95 {offsets = [0, 64], sizes = [8, 32], strides = [1, 1]} : vector<8x128xf32> to vector<8x32xf32>
    %99 = vector.extract_strided_slice %95 {offsets = [0, 96], sizes = [8, 32], strides = [1, 1]} : vector<8x128xf32> to vector<8x32xf32>
    %100 = arith.mulf %97, %81 : vector<8x32xf32>
    %101 = arith.mulf %96, %98 : vector<8x32xf32>
    %102 = arith.addf %100, %101 : vector<8x32xf32>
    %103 = math.tanh %102 : vector<8x32xf32>
    %104 = arith.mulf %99, %103 : vector<8x32xf32>
    %c24 = arith.constant 24 : index
    %c0_27 = arith.constant 0 : index
    %105 = vector.load %arg11[%c24, %c0_27] : memref<96x32xf32, #tpu.memory_space<vmem>>, vector<8x32xf32>
    tpu.vector_store %arg11[%c24, %c0_27], %104 {strides = array<i32>} : memref<96x32xf32, #tpu.memory_space<vmem>>, vector<8x32xf32>,
    %106 = vector.extract_strided_slice %7 {offsets = [32, 0], sizes = [8, 128], strides = [1, 1]} : vector<96x128xf32> to vector<8x128xf32>
    %cst_28 = arith.constant dense<0.000000e+00> : vector<8x128xf32>
    %107 = tpu.matmul %104, %0, %cst_28 {dimension_numbers = #tpu.dot_dimension_numbers<[1], [0], [0], [1], [0, 0, 1, 1], [], []>} : vector<8x32xf32>, vector<32x128xf32>, vector<8x128xf32> -> vector<8x128xf32>
    %108 = arith.addf %106, %107 : vector<8x128xf32>
    %109 = arith.mulf %16, %108 : vector<8x128xf32>
    %110 = arith.negf %109 : vector<8x128xf32>
    %111 = math.exp %110 : vector<8x128xf32>
    %cst_29 = arith.constant 1.000000e+00 : f32
    %112 = vector.broadcast %cst_29 : f32 to vector<8x128xf32>
    %113 = arith.addf %112, %111 : vector<8x128xf32>
    %114 = arith.divf %112, %113 : vector<8x128xf32>
    %115 = arith.mulf %16, %114 : vector<8x128xf32>
    %116 = arith.addf %115, %19 : vector<8x128xf32>
    %117 = vector.extract_strided_slice %116 {offsets = [0, 0], sizes = [8, 32], strides = [1, 1]} : vector<8x128xf32> to vector<8x32xf32>
    %118 = vector.extract_strided_slice %116 {offsets = [0, 32], sizes = [8, 32], strides = [1, 1]} : vector<8x128xf32> to vector<8x32xf32>
    %119 = vector.extract_strided_slice %116 {offsets = [0, 64], sizes = [8, 32], strides = [1, 1]} : vector<8x128xf32> to vector<8x32xf32>
    %120 = vector.extract_strided_slice %116 {offsets = [0, 96], sizes = [8, 32], strides = [1, 1]} : vector<8x128xf32> to vector<8x32xf32>
    %121 = arith.mulf %118, %102 : vector<8x32xf32>
    %122 = arith.mulf %117, %119 : vector<8x32xf32>
    %123 = arith.addf %121, %122 : vector<8x32xf32>
    %124 = math.tanh %123 : vector<8x32xf32>
    %125 = arith.mulf %120, %124 : vector<8x32xf32>
    %c32 = arith.constant 32 : index
    %c0_30 = arith.constant 0 : index
    %126 = vector.load %arg11[%c32, %c0_30] : memref<96x32xf32, #tpu.memory_space<vmem>>, vector<8x32xf32>
    tpu.vector_store %arg11[%c32, %c0_30], %125 {strides = array<i32>} : memref<96x32xf32, #tpu.memory_space<vmem>>, vector<8x32xf32>,
    %127 = vector.extract_strided_slice %7 {offsets = [40, 0], sizes = [8, 128], strides = [1, 1]} : vector<96x128xf32> to vector<8x128xf32>
    %cst_31 = arith.constant dense<0.000000e+00> : vector<8x128xf32>
    %128 = tpu.matmul %125, %0, %cst_31 {dimension_numbers = #tpu.dot_dimension_numbers<[1], [0], [0], [1], [0, 0, 1, 1], [], []>} : vector<8x32xf32>, vector<32x128xf32>, vector<8x128xf32> -> vector<8x128xf32>
    %129 = arith.addf %127, %128 : vector<8x128xf32>
    %130 = arith.mulf %16, %129 : vector<8x128xf32>
    %131 = arith.negf %130 : vector<8x128xf32>
    %132 = math.exp %131 : vector<8x128xf32>
    %cst_32 = arith.constant 1.000000e+00 : f32
    %133 = vector.broadcast %cst_32 : f32 to vector<8x128xf32>
    %134 = arith.addf %133, %132 : vector<8x128xf32>
    %135 = arith.divf %133, %134 : vector<8x128xf32>
    %136 = arith.mulf %16, %135 : vector<8x128xf32>
    %137 = arith.addf %136, %19 : vector<8x128xf32>
    %138 = vector.extract_strided_slice %137 {offsets = [0, 0], sizes = [8, 32], strides = [1, 1]} : vector<8x128xf32> to vector<8x32xf32>
    %139 = vector.extract_strided_slice %137 {offsets = [0, 32], sizes = [8, 32], strides = [1, 1]} : vector<8x128xf32> to vector<8x32xf32>
    %140 = vector.extract_strided_slice %137 {offsets = [0, 64], sizes = [8, 32], strides = [1, 1]} : vector<8x128xf32> to vector<8x32xf32>
    %141 = vector.extract_strided_slice %137 {offsets = [0, 96], sizes = [8, 32], strides = [1, 1]} : vector<8x128xf32> to vector<8x32xf32>
    %142 = arith.mulf %139, %123 : vector<8x32xf32>
    %143 = arith.mulf %138, %140 : vector<8x32xf32>
    %144 = arith.addf %142, %143 : vector<8x32xf32>
    %145 = math.tanh %144 : vector<8x32xf32>
    %146 = arith.mulf %141, %145 : vector<8x32xf32>
    %c40 = arith.constant 40 : index
    %c0_33 = arith.constant 0 : index
    %147 = vector.load %arg11[%c40, %c0_33] : memref<96x32xf32, #tpu.memory_space<vmem>>, vector<8x32xf32>
    tpu.vector_store %arg11[%c40, %c0_33], %146 {strides = array<i32>} : memref<96x32xf32, #tpu.memory_space<vmem>>, vector<8x32xf32>,
    %148 = vector.extract_strided_slice %7 {offsets = [48, 0], sizes = [8, 128], strides = [1, 1]} : vector<96x128xf32> to vector<8x128xf32>
    %cst_34 = arith.constant dense<0.000000e+00> : vector<8x128xf32>
    %149 = tpu.matmul %146, %0, %cst_34 {dimension_numbers = #tpu.dot_dimension_numbers<[1], [0], [0], [1], [0, 0, 1, 1], [], []>} : vector<8x32xf32>, vector<32x128xf32>, vector<8x128xf32> -> vector<8x128xf32>
    %150 = arith.addf %148, %149 : vector<8x128xf32>
    %151 = arith.mulf %16, %150 : vector<8x128xf32>
    %152 = arith.negf %151 : vector<8x128xf32>
    %153 = math.exp %152 : vector<8x128xf32>
    %cst_35 = arith.constant 1.000000e+00 : f32
    %154 = vector.broadcast %cst_35 : f32 to vector<8x128xf32>
    %155 = arith.addf %154, %153 : vector<8x128xf32>
    %156 = arith.divf %154, %155 : vector<8x128xf32>
    %157 = arith.mulf %16, %156 : vector<8x128xf32>
    %158 = arith.addf %157, %19 : vector<8x128xf32>
    %159 = vector.extract_strided_slice %158 {offsets = [0, 0], sizes = [8, 32], strides = [1, 1]} : vector<8x128xf32> to vector<8x32xf32>
    %160 = vector.extract_strided_slice %158 {offsets = [0, 32], sizes = [8, 32], strides = [1, 1]} : vector<8x128xf32> to vector<8x32xf32>
    %161 = vector.extract_strided_slice %158 {offsets = [0, 64], sizes = [8, 32], strides = [1, 1]} : vector<8x128xf32> to vector<8x32xf32>
    %162 = vector.extract_strided_slice %158 {offsets = [0, 96], sizes = [8, 32], strides = [1, 1]} : vector<8x128xf32> to vector<8x32xf32>
    %163 = arith.mulf %160, %144 : vector<8x32xf32>
    %164 = arith.mulf %159, %161 : vector<8x32xf32>
    %165 = arith.addf %163, %164 : vector<8x32xf32>
    %166 = math.tanh %165 : vector<8x32xf32>
    %167 = arith.mulf %162, %166 : vector<8x32xf32>
    %c48 = arith.constant 48 : index
    %c0_36 = arith.constant 0 : index
    %168 = vector.load %arg11[%c48, %c0_36] : memref<96x32xf32, #tpu.memory_space<vmem>>, vector<8x32xf32>
    tpu.vector_store %arg11[%c48, %c0_36], %167 {strides = array<i32>} : memref<96x32xf32, #tpu.memory_space<vmem>>, vector<8x32xf32>,
    %169 = vector.extract_strided_slice %7 {offsets = [56, 0], sizes = [8, 128], strides = [1, 1]} : vector<96x128xf32> to vector<8x128xf32>
    %cst_37 = arith.constant dense<0.000000e+00> : vector<8x128xf32>
    %170 = tpu.matmul %167, %0, %cst_37 {dimension_numbers = #tpu.dot_dimension_numbers<[1], [0], [0], [1], [0, 0, 1, 1], [], []>} : vector<8x32xf32>, vector<32x128xf32>, vector<8x128xf32> -> vector<8x128xf32>
    %171 = arith.addf %169, %170 : vector<8x128xf32>
    %172 = arith.mulf %16, %171 : vector<8x128xf32>
    %173 = arith.negf %172 : vector<8x128xf32>
    %174 = math.exp %173 : vector<8x128xf32>
    %cst_38 = arith.constant 1.000000e+00 : f32
    %175 = vector.broadcast %cst_38 : f32 to vector<8x128xf32>
    %176 = arith.addf %175, %174 : vector<8x128xf32>
    %177 = arith.divf %175, %176 : vector<8x128xf32>
    %178 = arith.mulf %16, %177 : vector<8x128xf32>
    %179 = arith.addf %178, %19 : vector<8x128xf32>
    %180 = vector.extract_strided_slice %179 {offsets = [0, 0], sizes = [8, 32], strides = [1, 1]} : vector<8x128xf32> to vector<8x32xf32>
    %181 = vector.extract_strided_slice %179 {offsets = [0, 32], sizes = [8, 32], strides = [1, 1]} : vector<8x128xf32> to vector<8x32xf32>
    %182 = vector.extract_strided_slice %179 {offsets = [0, 64], sizes = [8, 32], strides = [1, 1]} : vector<8x128xf32> to vector<8x32xf32>
    %183 = vector.extract_strided_slice %179 {offsets = [0, 96], sizes = [8, 32], strides = [1, 1]} : vector<8x128xf32> to vector<8x32xf32>
    %184 = arith.mulf %181, %165 : vector<8x32xf32>
    %185 = arith.mulf %180, %182 : vector<8x32xf32>
    %186 = arith.addf %184, %185 : vector<8x32xf32>
    %187 = math.tanh %186 : vector<8x32xf32>
    %188 = arith.mulf %183, %187 : vector<8x32xf32>
    %c56 = arith.constant 56 : index
    %c0_39 = arith.constant 0 : index
    %189 = vector.load %arg11[%c56, %c0_39] : memref<96x32xf32, #tpu.memory_space<vmem>>, vector<8x32xf32>
    tpu.vector_store %arg11[%c56, %c0_39], %188 {strides = array<i32>} : memref<96x32xf32, #tpu.memory_space<vmem>>, vector<8x32xf32>,
    %190 = vector.extract_strided_slice %7 {offsets = [64, 0], sizes = [8, 128], strides = [1, 1]} : vector<96x128xf32> to vector<8x128xf32>
    %cst_40 = arith.constant dense<0.000000e+00> : vector<8x128xf32>
    %191 = tpu.matmul %188, %0, %cst_40 {dimension_numbers = #tpu.dot_dimension_numbers<[1], [0], [0], [1], [0, 0, 1, 1], [], []>} : vector<8x32xf32>, vector<32x128xf32>, vector<8x128xf32> -> vector<8x128xf32>
    %192 = arith.addf %190, %191 : vector<8x128xf32>
    %193 = arith.mulf %16, %192 : vector<8x128xf32>
    %194 = arith.negf %193 : vector<8x128xf32>
    %195 = math.exp %194 : vector<8x128xf32>
    %cst_41 = arith.constant 1.000000e+00 : f32
    %196 = vector.broadcast %cst_41 : f32 to vector<8x128xf32>
    %197 = arith.addf %196, %195 : vector<8x128xf32>
    %198 = arith.divf %196, %197 : vector<8x128xf32>
    %199 = arith.mulf %16, %198 : vector<8x128xf32>
    %200 = arith.addf %199, %19 : vector<8x128xf32>
    %201 = vector.extract_strided_slice %200 {offsets = [0, 0], sizes = [8, 32], strides = [1, 1]} : vector<8x128xf32> to vector<8x32xf32>
    %202 = vector.extract_strided_slice %200 {offsets = [0, 32], sizes = [8, 32], strides = [1, 1]} : vector<8x128xf32> to vector<8x32xf32>
    %203 = vector.extract_strided_slice %200 {offsets = [0, 64], sizes = [8, 32], strides = [1, 1]} : vector<8x128xf32> to vector<8x32xf32>
    %204 = vector.extract_strided_slice %200 {offsets = [0, 96], sizes = [8, 32], strides = [1, 1]} : vector<8x128xf32> to vector<8x32xf32>
    %205 = arith.mulf %202, %186 : vector<8x32xf32>
    %206 = arith.mulf %201, %203 : vector<8x32xf32>
    %207 = arith.addf %205, %206 : vector<8x32xf32>
    %208 = math.tanh %207 : vector<8x32xf32>
    %209 = arith.mulf %204, %208 : vector<8x32xf32>
    %c64 = arith.constant 64 : index
    %c0_42 = arith.constant 0 : index
    %210 = vector.load %arg11[%c64, %c0_42] : memref<96x32xf32, #tpu.memory_space<vmem>>, vector<8x32xf32>
    tpu.vector_store %arg11[%c64, %c0_42], %209 {strides = array<i32>} : memref<96x32xf32, #tpu.memory_space<vmem>>, vector<8x32xf32>,
    %211 = vector.extract_strided_slice %7 {offsets = [72, 0], sizes = [8, 128], strides = [1, 1]} : vector<96x128xf32> to vector<8x128xf32>
    %cst_43 = arith.constant dense<0.000000e+00> : vector<8x128xf32>
    %212 = tpu.matmul %209, %0, %cst_43 {dimension_numbers = #tpu.dot_dimension_numbers<[1], [0], [0], [1], [0, 0, 1, 1], [], []>} : vector<8x32xf32>, vector<32x128xf32>, vector<8x128xf32> -> vector<8x128xf32>
    %213 = arith.addf %211, %212 : vector<8x128xf32>
    %214 = arith.mulf %16, %213 : vector<8x128xf32>
    %215 = arith.negf %214 : vector<8x128xf32>
    %216 = math.exp %215 : vector<8x128xf32>
    %cst_44 = arith.constant 1.000000e+00 : f32
    %217 = vector.broadcast %cst_44 : f32 to vector<8x128xf32>
    %218 = arith.addf %217, %216 : vector<8x128xf32>
    %219 = arith.divf %217, %218 : vector<8x128xf32>
    %220 = arith.mulf %16, %219 : vector<8x128xf32>
    %221 = arith.addf %220, %19 : vector<8x128xf32>
    %222 = vector.extract_strided_slice %221 {offsets = [0, 0], sizes = [8, 32], strides = [1, 1]} : vector<8x128xf32> to vector<8x32xf32>
    %223 = vector.extract_strided_slice %221 {offsets = [0, 32], sizes = [8, 32], strides = [1, 1]} : vector<8x128xf32> to vector<8x32xf32>
    %224 = vector.extract_strided_slice %221 {offsets = [0, 64], sizes = [8, 32], strides = [1, 1]} : vector<8x128xf32> to vector<8x32xf32>
    %225 = vector.extract_strided_slice %221 {offsets = [0, 96], sizes = [8, 32], strides = [1, 1]} : vector<8x128xf32> to vector<8x32xf32>
    %226 = arith.mulf %223, %207 : vector<8x32xf32>
    %227 = arith.mulf %222, %224 : vector<8x32xf32>
    %228 = arith.addf %226, %227 : vector<8x32xf32>
    %229 = math.tanh %228 : vector<8x32xf32>
    %230 = arith.mulf %225, %229 : vector<8x32xf32>
    %c72 = arith.constant 72 : index
    %c0_45 = arith.constant 0 : index
    %231 = vector.load %arg11[%c72, %c0_45] : memref<96x32xf32, #tpu.memory_space<vmem>>, vector<8x32xf32>
    tpu.vector_store %arg11[%c72, %c0_45], %230 {strides = array<i32>} : memref<96x32xf32, #tpu.memory_space<vmem>>, vector<8x32xf32>,
    %232 = vector.extract_strided_slice %7 {offsets = [80, 0], sizes = [8, 128], strides = [1, 1]} : vector<96x128xf32> to vector<8x128xf32>
    %cst_46 = arith.constant dense<0.000000e+00> : vector<8x128xf32>
    %233 = tpu.matmul %230, %0, %cst_46 {dimension_numbers = #tpu.dot_dimension_numbers<[1], [0], [0], [1], [0, 0, 1, 1], [], []>} : vector<8x32xf32>, vector<32x128xf32>, vector<8x128xf32> -> vector<8x128xf32>
    %234 = arith.addf %232, %233 : vector<8x128xf32>
    %235 = arith.mulf %16, %234 : vector<8x128xf32>
    %236 = arith.negf %235 : vector<8x128xf32>
    %237 = math.exp %236 : vector<8x128xf32>
    %cst_47 = arith.constant 1.000000e+00 : f32
    %238 = vector.broadcast %cst_47 : f32 to vector<8x128xf32>
    %239 = arith.addf %238, %237 : vector<8x128xf32>
    %240 = arith.divf %238, %239 : vector<8x128xf32>
    %241 = arith.mulf %16, %240 : vector<8x128xf32>
    %242 = arith.addf %241, %19 : vector<8x128xf32>
    %243 = vector.extract_strided_slice %242 {offsets = [0, 0], sizes = [8, 32], strides = [1, 1]} : vector<8x128xf32> to vector<8x32xf32>
    %244 = vector.extract_strided_slice %242 {offsets = [0, 32], sizes = [8, 32], strides = [1, 1]} : vector<8x128xf32> to vector<8x32xf32>
    %245 = vector.extract_strided_slice %242 {offsets = [0, 64], sizes = [8, 32], strides = [1, 1]} : vector<8x128xf32> to vector<8x32xf32>
    %246 = vector.extract_strided_slice %242 {offsets = [0, 96], sizes = [8, 32], strides = [1, 1]} : vector<8x128xf32> to vector<8x32xf32>
    %247 = arith.mulf %244, %228 : vector<8x32xf32>
    %248 = arith.mulf %243, %245 : vector<8x32xf32>
    %249 = arith.addf %247, %248 : vector<8x32xf32>
    %250 = math.tanh %249 : vector<8x32xf32>
    %251 = arith.mulf %246, %250 : vector<8x32xf32>
    %c80 = arith.constant 80 : index
    %c0_48 = arith.constant 0 : index
    %252 = vector.load %arg11[%c80, %c0_48] : memref<96x32xf32, #tpu.memory_space<vmem>>, vector<8x32xf32>
    tpu.vector_store %arg11[%c80, %c0_48], %251 {strides = array<i32>} : memref<96x32xf32, #tpu.memory_space<vmem>>, vector<8x32xf32>,
    %253 = vector.extract_strided_slice %7 {offsets = [88, 0], sizes = [8, 128], strides = [1, 1]} : vector<96x128xf32> to vector<8x128xf32>
    %cst_49 = arith.constant dense<0.000000e+00> : vector<8x128xf32>
    %254 = tpu.matmul %251, %0, %cst_49 {dimension_numbers = #tpu.dot_dimension_numbers<[1], [0], [0], [1], [0, 0, 1, 1], [], []>} : vector<8x32xf32>, vector<32x128xf32>, vector<8x128xf32> -> vector<8x128xf32>
    %255 = arith.addf %253, %254 : vector<8x128xf32>
    %256 = arith.mulf %16, %255 : vector<8x128xf32>
    %257 = arith.negf %256 : vector<8x128xf32>
    %258 = math.exp %257 : vector<8x128xf32>
    %cst_50 = arith.constant 1.000000e+00 : f32
    %259 = vector.broadcast %cst_50 : f32 to vector<8x128xf32>
    %260 = arith.addf %259, %258 : vector<8x128xf32>
    %261 = arith.divf %259, %260 : vector<8x128xf32>
    %262 = arith.mulf %16, %261 : vector<8x128xf32>
    %263 = arith.addf %262, %19 : vector<8x128xf32>
    %264 = vector.extract_strided_slice %263 {offsets = [0, 0], sizes = [8, 32], strides = [1, 1]} : vector<8x128xf32> to vector<8x32xf32>
    %265 = vector.extract_strided_slice %263 {offsets = [0, 32], sizes = [8, 32], strides = [1, 1]} : vector<8x128xf32> to vector<8x32xf32>
    %266 = vector.extract_strided_slice %263 {offsets = [0, 64], sizes = [8, 32], strides = [1, 1]} : vector<8x128xf32> to vector<8x32xf32>
    %267 = vector.extract_strided_slice %263 {offsets = [0, 96], sizes = [8, 32], strides = [1, 1]} : vector<8x128xf32> to vector<8x32xf32>
    %268 = arith.mulf %265, %249 : vector<8x32xf32>
    %269 = arith.mulf %264, %266 : vector<8x32xf32>
    %270 = arith.addf %268, %269 : vector<8x32xf32>
    %271 = math.tanh %270 : vector<8x32xf32>
    %272 = arith.mulf %267, %271 : vector<8x32xf32>
    %c88 = arith.constant 88 : index
    %c0_51 = arith.constant 0 : index
    %273 = vector.load %arg11[%c88, %c0_51] : memref<96x32xf32, #tpu.memory_space<vmem>>, vector<8x32xf32>
    tpu.vector_store %arg11[%c88, %c0_51], %272 {strides = array<i32>} : memref<96x32xf32, #tpu.memory_space<vmem>>, vector<8x32xf32>,
    %c0_52 = arith.constant 0 : index
    %c0_53 = arith.constant 0 : index
    %274 = vector.load %arg11[%c0_52, %c0_53] : memref<96x32xf32, #tpu.memory_space<vmem>>, vector<96x32xf32>
    %c0_54 = arith.constant 0 : index
    %c0_55 = arith.constant 0 : index
    %275 = vector.load %arg5[%c0_54, %c0_55] : memref<32x128xf32, #tpu.memory_space<vmem>>, vector<32x128xf32>
    %cst_56 = arith.constant dense<0.000000e+00> : vector<96x128xf32>
    %276 = tpu.matmul %274, %275, %cst_56 {dimension_numbers = #tpu.dot_dimension_numbers<[1], [0], [0], [1], [0, 0, 1, 1], [], []>} : vector<96x32xf32>, vector<32x128xf32>, vector<96x128xf32> -> vector<96x128xf32>
    %c0_57 = arith.constant 0 : index
    %c0_58 = arith.constant 0 : index
    %277 = vector.load %arg6[%c0_57, %c0_58] : memref<1x128xf32, #tpu.memory_space<vmem>>, vector<1x128xf32>
    %278 = vector.broadcast %277 : vector<1x128xf32> to vector<96x128xf32>
    %279 = arith.addf %276, %278 : vector<96x128xf32>
    %cst_59 = arith.constant 0.000000e+00 : f32
    %280 = vector.broadcast %cst_59 : f32 to vector<8x32xf32>
    %cst_60 = arith.constant 0.000000e+00 : f32
    %281 = vector.broadcast %cst_60 : f32 to vector<8x32xf32>
    %282 = vector.extract_strided_slice %279 {offsets = [0, 0], sizes = [8, 128], strides = [1, 1]} : vector<96x128xf32> to vector<8x128xf32>
    %cst_61 = arith.constant dense<0.000000e+00> : vector<8x128xf32>
    %283 = tpu.matmul %280, %1, %cst_61 {dimension_numbers = #tpu.dot_dimension_numbers<[1], [0], [0], [1], [0, 0, 1, 1], [], []>} : vector<8x32xf32>, vector<32x128xf32>, vector<8x128xf32> -> vector<8x128xf32>
    %284 = arith.addf %282, %283 : vector<8x128xf32>
    %285 = arith.mulf %16, %284 : vector<8x128xf32>
    %286 = arith.negf %285 : vector<8x128xf32>
    %287 = math.exp %286 : vector<8x128xf32>
    %cst_62 = arith.constant 1.000000e+00 : f32
    %288 = vector.broadcast %cst_62 : f32 to vector<8x128xf32>
    %289 = arith.addf %288, %287 : vector<8x128xf32>
    %290 = arith.divf %288, %289 : vector<8x128xf32>
    %291 = arith.mulf %16, %290 : vector<8x128xf32>
    %292 = arith.addf %291, %19 : vector<8x128xf32>
    %293 = vector.extract_strided_slice %292 {offsets = [0, 0], sizes = [8, 32], strides = [1, 1]} : vector<8x128xf32> to vector<8x32xf32>
    %294 = vector.extract_strided_slice %292 {offsets = [0, 32], sizes = [8, 32], strides = [1, 1]} : vector<8x128xf32> to vector<8x32xf32>
    %295 = vector.extract_strided_slice %292 {offsets = [0, 64], sizes = [8, 32], strides = [1, 1]} : vector<8x128xf32> to vector<8x32xf32>
    %296 = vector.extract_strided_slice %292 {offsets = [0, 96], sizes = [8, 32], strides = [1, 1]} : vector<8x128xf32> to vector<8x32xf32>
    %297 = arith.mulf %294, %281 : vector<8x32xf32>
    %298 = arith.mulf %293, %295 : vector<8x32xf32>
    %299 = arith.addf %297, %298 : vector<8x32xf32>
    %300 = math.tanh %299 : vector<8x32xf32>
    %301 = arith.mulf %296, %300 : vector<8x32xf32>
    %c0_63 = arith.constant 0 : index
    %c0_64 = arith.constant 0 : index
    %302 = vector.load %arg12[%c0_63, %c0_64] : memref<96x32xf32, #tpu.memory_space<vmem>>, vector<8x32xf32>
    tpu.vector_store %arg12[%c0_63, %c0_64], %301 {strides = array<i32>} : memref<96x32xf32, #tpu.memory_space<vmem>>, vector<8x32xf32>,
    %303 = vector.extract_strided_slice %279 {offsets = [8, 0], sizes = [8, 128], strides = [1, 1]} : vector<96x128xf32> to vector<8x128xf32>
    %cst_65 = arith.constant dense<0.000000e+00> : vector<8x128xf32>
    %304 = tpu.matmul %301, %1, %cst_65 {dimension_numbers = #tpu.dot_dimension_numbers<[1], [0], [0], [1], [0, 0, 1, 1], [], []>} : vector<8x32xf32>, vector<32x128xf32>, vector<8x128xf32> -> vector<8x128xf32>
    %305 = arith.addf %303, %304 : vector<8x128xf32>
    %306 = arith.mulf %16, %305 : vector<8x128xf32>
    %307 = arith.negf %306 : vector<8x128xf32>
    %308 = math.exp %307 : vector<8x128xf32>
    %cst_66 = arith.constant 1.000000e+00 : f32
    %309 = vector.broadcast %cst_66 : f32 to vector<8x128xf32>
    %310 = arith.addf %309, %308 : vector<8x128xf32>
    %311 = arith.divf %309, %310 : vector<8x128xf32>
    %312 = arith.mulf %16, %311 : vector<8x128xf32>
    %313 = arith.addf %312, %19 : vector<8x128xf32>
    %314 = vector.extract_strided_slice %313 {offsets = [0, 0], sizes = [8, 32], strides = [1, 1]} : vector<8x128xf32> to vector<8x32xf32>
    %315 = vector.extract_strided_slice %313 {offsets = [0, 32], sizes = [8, 32], strides = [1, 1]} : vector<8x128xf32> to vector<8x32xf32>
    %316 = vector.extract_strided_slice %313 {offsets = [0, 64], sizes = [8, 32], strides = [1, 1]} : vector<8x128xf32> to vector<8x32xf32>
    %317 = vector.extract_strided_slice %313 {offsets = [0, 96], sizes = [8, 32], strides = [1, 1]} : vector<8x128xf32> to vector<8x32xf32>
    %318 = arith.mulf %315, %299 : vector<8x32xf32>
    %319 = arith.mulf %314, %316 : vector<8x32xf32>
    %320 = arith.addf %318, %319 : vector<8x32xf32>
    %321 = math.tanh %320 : vector<8x32xf32>
    %322 = arith.mulf %317, %321 : vector<8x32xf32>
    %c8_67 = arith.constant 8 : index
    %c0_68 = arith.constant 0 : index
    %323 = vector.load %arg12[%c8_67, %c0_68] : memref<96x32xf32, #tpu.memory_space<vmem>>, vector<8x32xf32>
    tpu.vector_store %arg12[%c8_67, %c0_68], %322 {strides = array<i32>} : memref<96x32xf32, #tpu.memory_space<vmem>>, vector<8x32xf32>,
    %324 = vector.extract_strided_slice %279 {offsets = [16, 0], sizes = [8, 128], strides = [1, 1]} : vector<96x128xf32> to vector<8x128xf32>
    %cst_69 = arith.constant dense<0.000000e+00> : vector<8x128xf32>
    %325 = tpu.matmul %322, %1, %cst_69 {dimension_numbers = #tpu.dot_dimension_numbers<[1], [0], [0], [1], [0, 0, 1, 1], [], []>} : vector<8x32xf32>, vector<32x128xf32>, vector<8x128xf32> -> vector<8x128xf32>
    %326 = arith.addf %324, %325 : vector<8x128xf32>
    %327 = arith.mulf %16, %326 : vector<8x128xf32>
    %328 = arith.negf %327 : vector<8x128xf32>
    %329 = math.exp %328 : vector<8x128xf32>
    %cst_70 = arith.constant 1.000000e+00 : f32
    %330 = vector.broadcast %cst_70 : f32 to vector<8x128xf32>
    %331 = arith.addf %330, %329 : vector<8x128xf32>
    %332 = arith.divf %330, %331 : vector<8x128xf32>
    %333 = arith.mulf %16, %332 : vector<8x128xf32>
    %334 = arith.addf %333, %19 : vector<8x128xf32>
    %335 = vector.extract_strided_slice %334 {offsets = [0, 0], sizes = [8, 32], strides = [1, 1]} : vector<8x128xf32> to vector<8x32xf32>
    %336 = vector.extract_strided_slice %334 {offsets = [0, 32], sizes = [8, 32], strides = [1, 1]} : vector<8x128xf32> to vector<8x32xf32>
    %337 = vector.extract_strided_slice %334 {offsets = [0, 64], sizes = [8, 32], strides = [1, 1]} : vector<8x128xf32> to vector<8x32xf32>
    %338 = vector.extract_strided_slice %334 {offsets = [0, 96], sizes = [8, 32], strides = [1, 1]} : vector<8x128xf32> to vector<8x32xf32>
    %339 = arith.mulf %336, %320 : vector<8x32xf32>
    %340 = arith.mulf %335, %337 : vector<8x32xf32>
    %341 = arith.addf %339, %340 : vector<8x32xf32>
    %342 = math.tanh %341 : vector<8x32xf32>
    %343 = arith.mulf %338, %342 : vector<8x32xf32>
    %c16_71 = arith.constant 16 : index
    %c0_72 = arith.constant 0 : index
    %344 = vector.load %arg12[%c16_71, %c0_72] : memref<96x32xf32, #tpu.memory_space<vmem>>, vector<8x32xf32>
    tpu.vector_store %arg12[%c16_71, %c0_72], %343 {strides = array<i32>} : memref<96x32xf32, #tpu.memory_space<vmem>>, vector<8x32xf32>,
    %345 = vector.extract_strided_slice %279 {offsets = [24, 0], sizes = [8, 128], strides = [1, 1]} : vector<96x128xf32> to vector<8x128xf32>
    %cst_73 = arith.constant dense<0.000000e+00> : vector<8x128xf32>
    %346 = tpu.matmul %343, %1, %cst_73 {dimension_numbers = #tpu.dot_dimension_numbers<[1], [0], [0], [1], [0, 0, 1, 1], [], []>} : vector<8x32xf32>, vector<32x128xf32>, vector<8x128xf32> -> vector<8x128xf32>
    %347 = arith.addf %345, %346 : vector<8x128xf32>
    %348 = arith.mulf %16, %347 : vector<8x128xf32>
    %349 = arith.negf %348 : vector<8x128xf32>
    %350 = math.exp %349 : vector<8x128xf32>
    %cst_74 = arith.constant 1.000000e+00 : f32
    %351 = vector.broadcast %cst_74 : f32 to vector<8x128xf32>
    %352 = arith.addf %351, %350 : vector<8x128xf32>
    %353 = arith.divf %351, %352 : vector<8x128xf32>
    %354 = arith.mulf %16, %353 : vector<8x128xf32>
    %355 = arith.addf %354, %19 : vector<8x128xf32>
    %356 = vector.extract_strided_slice %355 {offsets = [0, 0], sizes = [8, 32], strides = [1, 1]} : vector<8x128xf32> to vector<8x32xf32>
    %357 = vector.extract_strided_slice %355 {offsets = [0, 32], sizes = [8, 32], strides = [1, 1]} : vector<8x128xf32> to vector<8x32xf32>
    %358 = vector.extract_strided_slice %355 {offsets = [0, 64], sizes = [8, 32], strides = [1, 1]} : vector<8x128xf32> to vector<8x32xf32>
    %359 = vector.extract_strided_slice %355 {offsets = [0, 96], sizes = [8, 32], strides = [1, 1]} : vector<8x128xf32> to vector<8x32xf32>
    %360 = arith.mulf %357, %341 : vector<8x32xf32>
    %361 = arith.mulf %356, %358 : vector<8x32xf32>
    %362 = arith.addf %360, %361 : vector<8x32xf32>
    %363 = math.tanh %362 : vector<8x32xf32>
    %364 = arith.mulf %359, %363 : vector<8x32xf32>
    %c24_75 = arith.constant 24 : index
    %c0_76 = arith.constant 0 : index
    %365 = vector.load %arg12[%c24_75, %c0_76] : memref<96x32xf32, #tpu.memory_space<vmem>>, vector<8x32xf32>
    tpu.vector_store %arg12[%c24_75, %c0_76], %364 {strides = array<i32>} : memref<96x32xf32, #tpu.memory_space<vmem>>, vector<8x32xf32>,
    %366 = vector.extract_strided_slice %279 {offsets = [32, 0], sizes = [8, 128], strides = [1, 1]} : vector<96x128xf32> to vector<8x128xf32>
    %cst_77 = arith.constant dense<0.000000e+00> : vector<8x128xf32>
    %367 = tpu.matmul %364, %1, %cst_77 {dimension_numbers = #tpu.dot_dimension_numbers<[1], [0], [0], [1], [0, 0, 1, 1], [], []>} : vector<8x32xf32>, vector<32x128xf32>, vector<8x128xf32> -> vector<8x128xf32>
    %368 = arith.addf %366, %367 : vector<8x128xf32>
    %369 = arith.mulf %16, %368 : vector<8x128xf32>
    %370 = arith.negf %369 : vector<8x128xf32>
    %371 = math.exp %370 : vector<8x128xf32>
    %cst_78 = arith.constant 1.000000e+00 : f32
    %372 = vector.broadcast %cst_78 : f32 to vector<8x128xf32>
    %373 = arith.addf %372, %371 : vector<8x128xf32>
    %374 = arith.divf %372, %373 : vector<8x128xf32>
    %375 = arith.mulf %16, %374 : vector<8x128xf32>
    %376 = arith.addf %375, %19 : vector<8x128xf32>
    %377 = vector.extract_strided_slice %376 {offsets = [0, 0], sizes = [8, 32], strides = [1, 1]} : vector<8x128xf32> to vector<8x32xf32>
    %378 = vector.extract_strided_slice %376 {offsets = [0, 32], sizes = [8, 32], strides = [1, 1]} : vector<8x128xf32> to vector<8x32xf32>
    %379 = vector.extract_strided_slice %376 {offsets = [0, 64], sizes = [8, 32], strides = [1, 1]} : vector<8x128xf32> to vector<8x32xf32>
    %380 = vector.extract_strided_slice %376 {offsets = [0, 96], sizes = [8, 32], strides = [1, 1]} : vector<8x128xf32> to vector<8x32xf32>
    %381 = arith.mulf %378, %362 : vector<8x32xf32>
    %382 = arith.mulf %377, %379 : vector<8x32xf32>
    %383 = arith.addf %381, %382 : vector<8x32xf32>
    %384 = math.tanh %383 : vector<8x32xf32>
    %385 = arith.mulf %380, %384 : vector<8x32xf32>
    %c32_79 = arith.constant 32 : index
    %c0_80 = arith.constant 0 : index
    %386 = vector.load %arg12[%c32_79, %c0_80] : memref<96x32xf32, #tpu.memory_space<vmem>>, vector<8x32xf32>
    tpu.vector_store %arg12[%c32_79, %c0_80], %385 {strides = array<i32>} : memref<96x32xf32, #tpu.memory_space<vmem>>, vector<8x32xf32>,
    %387 = vector.extract_strided_slice %279 {offsets = [40, 0], sizes = [8, 128], strides = [1, 1]} : vector<96x128xf32> to vector<8x128xf32>
    %cst_81 = arith.constant dense<0.000000e+00> : vector<8x128xf32>
    %388 = tpu.matmul %385, %1, %cst_81 {dimension_numbers = #tpu.dot_dimension_numbers<[1], [0], [0], [1], [0, 0, 1, 1], [], []>} : vector<8x32xf32>, vector<32x128xf32>, vector<8x128xf32> -> vector<8x128xf32>
    %389 = arith.addf %387, %388 : vector<8x128xf32>
    %390 = arith.mulf %16, %389 : vector<8x128xf32>
    %391 = arith.negf %390 : vector<8x128xf32>
    %392 = math.exp %391 : vector<8x128xf32>
    %cst_82 = arith.constant 1.000000e+00 : f32
    %393 = vector.broadcast %cst_82 : f32 to vector<8x128xf32>
    %394 = arith.addf %393, %392 : vector<8x128xf32>
    %395 = arith.divf %393, %394 : vector<8x128xf32>
    %396 = arith.mulf %16, %395 : vector<8x128xf32>
    %397 = arith.addf %396, %19 : vector<8x128xf32>
    %398 = vector.extract_strided_slice %397 {offsets = [0, 0], sizes = [8, 32], strides = [1, 1]} : vector<8x128xf32> to vector<8x32xf32>
    %399 = vector.extract_strided_slice %397 {offsets = [0, 32], sizes = [8, 32], strides = [1, 1]} : vector<8x128xf32> to vector<8x32xf32>
    %400 = vector.extract_strided_slice %397 {offsets = [0, 64], sizes = [8, 32], strides = [1, 1]} : vector<8x128xf32> to vector<8x32xf32>
    %401 = vector.extract_strided_slice %397 {offsets = [0, 96], sizes = [8, 32], strides = [1, 1]} : vector<8x128xf32> to vector<8x32xf32>
    %402 = arith.mulf %399, %383 : vector<8x32xf32>
    %403 = arith.mulf %398, %400 : vector<8x32xf32>
    %404 = arith.addf %402, %403 : vector<8x32xf32>
    %405 = math.tanh %404 : vector<8x32xf32>
    %406 = arith.mulf %401, %405 : vector<8x32xf32>
    %c40_83 = arith.constant 40 : index
    %c0_84 = arith.constant 0 : index
    %407 = vector.load %arg12[%c40_83, %c0_84] : memref<96x32xf32, #tpu.memory_space<vmem>>, vector<8x32xf32>
    tpu.vector_store %arg12[%c40_83, %c0_84], %406 {strides = array<i32>} : memref<96x32xf32, #tpu.memory_space<vmem>>, vector<8x32xf32>,
    %408 = vector.extract_strided_slice %279 {offsets = [48, 0], sizes = [8, 128], strides = [1, 1]} : vector<96x128xf32> to vector<8x128xf32>
    %cst_85 = arith.constant dense<0.000000e+00> : vector<8x128xf32>
    %409 = tpu.matmul %406, %1, %cst_85 {dimension_numbers = #tpu.dot_dimension_numbers<[1], [0], [0], [1], [0, 0, 1, 1], [], []>} : vector<8x32xf32>, vector<32x128xf32>, vector<8x128xf32> -> vector<8x128xf32>
    %410 = arith.addf %408, %409 : vector<8x128xf32>
    %411 = arith.mulf %16, %410 : vector<8x128xf32>
    %412 = arith.negf %411 : vector<8x128xf32>
    %413 = math.exp %412 : vector<8x128xf32>
    %cst_86 = arith.constant 1.000000e+00 : f32
    %414 = vector.broadcast %cst_86 : f32 to vector<8x128xf32>
    %415 = arith.addf %414, %413 : vector<8x128xf32>
    %416 = arith.divf %414, %415 : vector<8x128xf32>
    %417 = arith.mulf %16, %416 : vector<8x128xf32>
    %418 = arith.addf %417, %19 : vector<8x128xf32>
    %419 = vector.extract_strided_slice %418 {offsets = [0, 0], sizes = [8, 32], strides = [1, 1]} : vector<8x128xf32> to vector<8x32xf32>
    %420 = vector.extract_strided_slice %418 {offsets = [0, 32], sizes = [8, 32], strides = [1, 1]} : vector<8x128xf32> to vector<8x32xf32>
    %421 = vector.extract_strided_slice %418 {offsets = [0, 64], sizes = [8, 32], strides = [1, 1]} : vector<8x128xf32> to vector<8x32xf32>
    %422 = vector.extract_strided_slice %418 {offsets = [0, 96], sizes = [8, 32], strides = [1, 1]} : vector<8x128xf32> to vector<8x32xf32>
    %423 = arith.mulf %420, %404 : vector<8x32xf32>
    %424 = arith.mulf %419, %421 : vector<8x32xf32>
    %425 = arith.addf %423, %424 : vector<8x32xf32>
    %426 = math.tanh %425 : vector<8x32xf32>
    %427 = arith.mulf %422, %426 : vector<8x32xf32>
    %c48_87 = arith.constant 48 : index
    %c0_88 = arith.constant 0 : index
    %428 = vector.load %arg12[%c48_87, %c0_88] : memref<96x32xf32, #tpu.memory_space<vmem>>, vector<8x32xf32>
    tpu.vector_store %arg12[%c48_87, %c0_88], %427 {strides = array<i32>} : memref<96x32xf32, #tpu.memory_space<vmem>>, vector<8x32xf32>,
    %429 = vector.extract_strided_slice %279 {offsets = [56, 0], sizes = [8, 128], strides = [1, 1]} : vector<96x128xf32> to vector<8x128xf32>
    %cst_89 = arith.constant dense<0.000000e+00> : vector<8x128xf32>
    %430 = tpu.matmul %427, %1, %cst_89 {dimension_numbers = #tpu.dot_dimension_numbers<[1], [0], [0], [1], [0, 0, 1, 1], [], []>} : vector<8x32xf32>, vector<32x128xf32>, vector<8x128xf32> -> vector<8x128xf32>
    %431 = arith.addf %429, %430 : vector<8x128xf32>
    %432 = arith.mulf %16, %431 : vector<8x128xf32>
    %433 = arith.negf %432 : vector<8x128xf32>
    %434 = math.exp %433 : vector<8x128xf32>
    %cst_90 = arith.constant 1.000000e+00 : f32
    %435 = vector.broadcast %cst_90 : f32 to vector<8x128xf32>
    %436 = arith.addf %435, %434 : vector<8x128xf32>
    %437 = arith.divf %435, %436 : vector<8x128xf32>
    %438 = arith.mulf %16, %437 : vector<8x128xf32>
    %439 = arith.addf %438, %19 : vector<8x128xf32>
    %440 = vector.extract_strided_slice %439 {offsets = [0, 0], sizes = [8, 32], strides = [1, 1]} : vector<8x128xf32> to vector<8x32xf32>
    %441 = vector.extract_strided_slice %439 {offsets = [0, 32], sizes = [8, 32], strides = [1, 1]} : vector<8x128xf32> to vector<8x32xf32>
    %442 = vector.extract_strided_slice %439 {offsets = [0, 64], sizes = [8, 32], strides = [1, 1]} : vector<8x128xf32> to vector<8x32xf32>
    %443 = vector.extract_strided_slice %439 {offsets = [0, 96], sizes = [8, 32], strides = [1, 1]} : vector<8x128xf32> to vector<8x32xf32>
    %444 = arith.mulf %441, %425 : vector<8x32xf32>
    %445 = arith.mulf %440, %442 : vector<8x32xf32>
    %446 = arith.addf %444, %445 : vector<8x32xf32>
    %447 = math.tanh %446 : vector<8x32xf32>
    %448 = arith.mulf %443, %447 : vector<8x32xf32>
    %c56_91 = arith.constant 56 : index
    %c0_92 = arith.constant 0 : index
    %449 = vector.load %arg12[%c56_91, %c0_92] : memref<96x32xf32, #tpu.memory_space<vmem>>, vector<8x32xf32>
    tpu.vector_store %arg12[%c56_91, %c0_92], %448 {strides = array<i32>} : memref<96x32xf32, #tpu.memory_space<vmem>>, vector<8x32xf32>,
    %450 = vector.extract_strided_slice %279 {offsets = [64, 0], sizes = [8, 128], strides = [1, 1]} : vector<96x128xf32> to vector<8x128xf32>
    %cst_93 = arith.constant dense<0.000000e+00> : vector<8x128xf32>
    %451 = tpu.matmul %448, %1, %cst_93 {dimension_numbers = #tpu.dot_dimension_numbers<[1], [0], [0], [1], [0, 0, 1, 1], [], []>} : vector<8x32xf32>, vector<32x128xf32>, vector<8x128xf32> -> vector<8x128xf32>
    %452 = arith.addf %450, %451 : vector<8x128xf32>
    %453 = arith.mulf %16, %452 : vector<8x128xf32>
    %454 = arith.negf %453 : vector<8x128xf32>
    %455 = math.exp %454 : vector<8x128xf32>
    %cst_94 = arith.constant 1.000000e+00 : f32
    %456 = vector.broadcast %cst_94 : f32 to vector<8x128xf32>
    %457 = arith.addf %456, %455 : vector<8x128xf32>
    %458 = arith.divf %456, %457 : vector<8x128xf32>
    %459 = arith.mulf %16, %458 : vector<8x128xf32>
    %460 = arith.addf %459, %19 : vector<8x128xf32>
    %461 = vector.extract_strided_slice %460 {offsets = [0, 0], sizes = [8, 32], strides = [1, 1]} : vector<8x128xf32> to vector<8x32xf32>
    %462 = vector.extract_strided_slice %460 {offsets = [0, 32], sizes = [8, 32], strides = [1, 1]} : vector<8x128xf32> to vector<8x32xf32>
    %463 = vector.extract_strided_slice %460 {offsets = [0, 64], sizes = [8, 32], strides = [1, 1]} : vector<8x128xf32> to vector<8x32xf32>
    %464 = vector.extract_strided_slice %460 {offsets = [0, 96], sizes = [8, 32], strides = [1, 1]} : vector<8x128xf32> to vector<8x32xf32>
    %465 = arith.mulf %462, %446 : vector<8x32xf32>
    %466 = arith.mulf %461, %463 : vector<8x32xf32>
    %467 = arith.addf %465, %466 : vector<8x32xf32>
    %468 = math.tanh %467 : vector<8x32xf32>
    %469 = arith.mulf %464, %468 : vector<8x32xf32>
    %c64_95 = arith.constant 64 : index
    %c0_96 = arith.constant 0 : index
    %470 = vector.load %arg12[%c64_95, %c0_96] : memref<96x32xf32, #tpu.memory_space<vmem>>, vector<8x32xf32>
    tpu.vector_store %arg12[%c64_95, %c0_96], %469 {strides = array<i32>} : memref<96x32xf32, #tpu.memory_space<vmem>>, vector<8x32xf32>,
    %471 = vector.extract_strided_slice %279 {offsets = [72, 0], sizes = [8, 128], strides = [1, 1]} : vector<96x128xf32> to vector<8x128xf32>
    %cst_97 = arith.constant dense<0.000000e+00> : vector<8x128xf32>
    %472 = tpu.matmul %469, %1, %cst_97 {dimension_numbers = #tpu.dot_dimension_numbers<[1], [0], [0], [1], [0, 0, 1, 1], [], []>} : vector<8x32xf32>, vector<32x128xf32>, vector<8x128xf32> -> vector<8x128xf32>
    %473 = arith.addf %471, %472 : vector<8x128xf32>
    %474 = arith.mulf %16, %473 : vector<8x128xf32>
    %475 = arith.negf %474 : vector<8x128xf32>
    %476 = math.exp %475 : vector<8x128xf32>
    %cst_98 = arith.constant 1.000000e+00 : f32
    %477 = vector.broadcast %cst_98 : f32 to vector<8x128xf32>
    %478 = arith.addf %477, %476 : vector<8x128xf32>
    %479 = arith.divf %477, %478 : vector<8x128xf32>
    %480 = arith.mulf %16, %479 : vector<8x128xf32>
    %481 = arith.addf %480, %19 : vector<8x128xf32>
    %482 = vector.extract_strided_slice %481 {offsets = [0, 0], sizes = [8, 32], strides = [1, 1]} : vector<8x128xf32> to vector<8x32xf32>
    %483 = vector.extract_strided_slice %481 {offsets = [0, 32], sizes = [8, 32], strides = [1, 1]} : vector<8x128xf32> to vector<8x32xf32>
    %484 = vector.extract_strided_slice %481 {offsets = [0, 64], sizes = [8, 32], strides = [1, 1]} : vector<8x128xf32> to vector<8x32xf32>
    %485 = vector.extract_strided_slice %481 {offsets = [0, 96], sizes = [8, 32], strides = [1, 1]} : vector<8x128xf32> to vector<8x32xf32>
    %486 = arith.mulf %483, %467 : vector<8x32xf32>
    %487 = arith.mulf %482, %484 : vector<8x32xf32>
    %488 = arith.addf %486, %487 : vector<8x32xf32>
    %489 = math.tanh %488 : vector<8x32xf32>
    %490 = arith.mulf %485, %489 : vector<8x32xf32>
    %c72_99 = arith.constant 72 : index
    %c0_100 = arith.constant 0 : index
    %491 = vector.load %arg12[%c72_99, %c0_100] : memref<96x32xf32, #tpu.memory_space<vmem>>, vector<8x32xf32>
    tpu.vector_store %arg12[%c72_99, %c0_100], %490 {strides = array<i32>} : memref<96x32xf32, #tpu.memory_space<vmem>>, vector<8x32xf32>,
    %492 = vector.extract_strided_slice %279 {offsets = [80, 0], sizes = [8, 128], strides = [1, 1]} : vector<96x128xf32> to vector<8x128xf32>
    %cst_101 = arith.constant dense<0.000000e+00> : vector<8x128xf32>
    %493 = tpu.matmul %490, %1, %cst_101 {dimension_numbers = #tpu.dot_dimension_numbers<[1], [0], [0], [1], [0, 0, 1, 1], [], []>} : vector<8x32xf32>, vector<32x128xf32>, vector<8x128xf32> -> vector<8x128xf32>
    %494 = arith.addf %492, %493 : vector<8x128xf32>
    %495 = arith.mulf %16, %494 : vector<8x128xf32>
    %496 = arith.negf %495 : vector<8x128xf32>
    %497 = math.exp %496 : vector<8x128xf32>
    %cst_102 = arith.constant 1.000000e+00 : f32
    %498 = vector.broadcast %cst_102 : f32 to vector<8x128xf32>
    %499 = arith.addf %498, %497 : vector<8x128xf32>
    %500 = arith.divf %498, %499 : vector<8x128xf32>
    %501 = arith.mulf %16, %500 : vector<8x128xf32>
    %502 = arith.addf %501, %19 : vector<8x128xf32>
    %503 = vector.extract_strided_slice %502 {offsets = [0, 0], sizes = [8, 32], strides = [1, 1]} : vector<8x128xf32> to vector<8x32xf32>
    %504 = vector.extract_strided_slice %502 {offsets = [0, 32], sizes = [8, 32], strides = [1, 1]} : vector<8x128xf32> to vector<8x32xf32>
    %505 = vector.extract_strided_slice %502 {offsets = [0, 64], sizes = [8, 32], strides = [1, 1]} : vector<8x128xf32> to vector<8x32xf32>
    %506 = vector.extract_strided_slice %502 {offsets = [0, 96], sizes = [8, 32], strides = [1, 1]} : vector<8x128xf32> to vector<8x32xf32>
    %507 = arith.mulf %504, %488 : vector<8x32xf32>
    %508 = arith.mulf %503, %505 : vector<8x32xf32>
    %509 = arith.addf %507, %508 : vector<8x32xf32>
    %510 = math.tanh %509 : vector<8x32xf32>
    %511 = arith.mulf %506, %510 : vector<8x32xf32>
    %c80_103 = arith.constant 80 : index
    %c0_104 = arith.constant 0 : index
    %512 = vector.load %arg12[%c80_103, %c0_104] : memref<96x32xf32, #tpu.memory_space<vmem>>, vector<8x32xf32>
    tpu.vector_store %arg12[%c80_103, %c0_104], %511 {strides = array<i32>} : memref<96x32xf32, #tpu.memory_space<vmem>>, vector<8x32xf32>,
    %513 = vector.extract_strided_slice %279 {offsets = [88, 0], sizes = [8, 128], strides = [1, 1]} : vector<96x128xf32> to vector<8x128xf32>
    %cst_105 = arith.constant dense<0.000000e+00> : vector<8x128xf32>
    %514 = tpu.matmul %511, %1, %cst_105 {dimension_numbers = #tpu.dot_dimension_numbers<[1], [0], [0], [1], [0, 0, 1, 1], [], []>} : vector<8x32xf32>, vector<32x128xf32>, vector<8x128xf32> -> vector<8x128xf32>
    %515 = arith.addf %513, %514 : vector<8x128xf32>
    %516 = arith.mulf %16, %515 : vector<8x128xf32>
    %517 = arith.negf %516 : vector<8x128xf32>
    %518 = math.exp %517 : vector<8x128xf32>
    %cst_106 = arith.constant 1.000000e+00 : f32
    %519 = vector.broadcast %cst_106 : f32 to vector<8x128xf32>
    %520 = arith.addf %519, %518 : vector<8x128xf32>
    %521 = arith.divf %519, %520 : vector<8x128xf32>
    %522 = arith.mulf %16, %521 : vector<8x128xf32>
    %523 = arith.addf %522, %19 : vector<8x128xf32>
    %524 = vector.extract_strided_slice %523 {offsets = [0, 0], sizes = [8, 32], strides = [1, 1]} : vector<8x128xf32> to vector<8x32xf32>
    %525 = vector.extract_strided_slice %523 {offsets = [0, 32], sizes = [8, 32], strides = [1, 1]} : vector<8x128xf32> to vector<8x32xf32>
    %526 = vector.extract_strided_slice %523 {offsets = [0, 64], sizes = [8, 32], strides = [1, 1]} : vector<8x128xf32> to vector<8x32xf32>
    %527 = vector.extract_strided_slice %523 {offsets = [0, 96], sizes = [8, 32], strides = [1, 1]} : vector<8x128xf32> to vector<8x32xf32>
    %528 = arith.mulf %525, %509 : vector<8x32xf32>
    %529 = arith.mulf %524, %526 : vector<8x32xf32>
    %530 = arith.addf %528, %529 : vector<8x32xf32>
    %531 = math.tanh %530 : vector<8x32xf32>
    %532 = arith.mulf %527, %531 : vector<8x32xf32>
    %c88_107 = arith.constant 88 : index
    %c0_108 = arith.constant 0 : index
    %533 = vector.load %arg12[%c88_107, %c0_108] : memref<96x32xf32, #tpu.memory_space<vmem>>, vector<8x32xf32>
    tpu.vector_store %arg12[%c88_107, %c0_108], %532 {strides = array<i32>} : memref<96x32xf32, #tpu.memory_space<vmem>>, vector<8x32xf32>,
    %c0_109 = arith.constant 0 : index
    %c0_110 = arith.constant 0 : index
    %534 = vector.load %arg12[%c0_109, %c0_110] : memref<96x32xf32, #tpu.memory_space<vmem>>, vector<96x32xf32>
    %c0_111 = arith.constant 0 : index
    %c0_112 = arith.constant 0 : index
    %535 = vector.load %arg8[%c0_111, %c0_112] : memref<32x128xf32, #tpu.memory_space<vmem>>, vector<32x128xf32>
    %cst_113 = arith.constant dense<0.000000e+00> : vector<96x128xf32>
    %536 = tpu.matmul %534, %535, %cst_113 {dimension_numbers = #tpu.dot_dimension_numbers<[1], [0], [0], [1], [0, 0, 1, 1], [], []>} : vector<96x32xf32>, vector<32x128xf32>, vector<96x128xf32> -> vector<96x128xf32>
    %c0_114 = arith.constant 0 : index
    %c0_115 = arith.constant 0 : index
    %537 = vector.load %arg9[%c0_114, %c0_115] : memref<1x128xf32, #tpu.memory_space<vmem>>, vector<1x128xf32>
    %538 = vector.broadcast %537 : vector<1x128xf32> to vector<96x128xf32>
    %539 = arith.addf %536, %538 : vector<96x128xf32>
    %cst_116 = arith.constant 0.000000e+00 : f32
    %540 = vector.broadcast %cst_116 : f32 to vector<96x128xf32>
    %541 = arith.maximumf %539, %540 : vector<96x128xf32>
    %c0_117 = arith.constant 0 : index
    %c0_118 = arith.constant 0 : index
    %542 = vector.load %arg10[%c0_117, %c0_118] : memref<96x128xf32, #tpu.memory_space<vmem>>, vector<96x128xf32>
    tpu.vector_store %arg10[%c0_117, %c0_118], %541 {strides = array<i32>} : memref<96x128xf32, #tpu.memory_space<vmem>>, vector<96x128xf32>,
    return
  }
  func.func @transform_0(%arg0: i32) -> (i32, i32) {
    %c0_i32 = arith.constant 0 : i32
    %c0_i32_0 = arith.constant 0 : i32
    %c0_i32_1 = arith.constant 0 : i32
    return %c0_i32, %c0_i32_0 : i32, i32
  }
  func.func @transform_1(%arg0: i32) -> (i32, i32) {
    %c0_i32 = arith.constant 0 : i32
    %c0_i32_0 = arith.constant 0 : i32
    %c0_i32_1 = arith.constant 0 : i32
    return %c0_i32, %c0_i32_0 : i32, i32
  }
  func.func @transform_2(%arg0: i32) -> (i32, i32) {
    %c0_i32 = arith.constant 0 : i32
    %c0_i32_0 = arith.constant 0 : i32
    %c0_i32_1 = arith.constant 0 : i32
    return %c0_i32, %c0_i32_0 : i32, i32
  }
  func.func @transform_3(%arg0: i32) -> (i32, i32) {
    %c0_i32 = arith.constant 0 : i32
    %c0_i32_0 = arith.constant 0 : i32
    %c0_i32_1 = arith.constant 0 : i32
    return %c0_i32, %c0_i32_0 : i32, i32
  }
  func.func @transform_4(%arg0: i32) -> (i32, i32) {
    %c0_i32 = arith.constant 0 : i32
    %c0_i32_0 = arith.constant 0 : i32
    %c0_i32_1 = arith.constant 0 : i32
    return %c0_i32, %c0_i32_0 : i32, i32
  }
  func.func @transform_5(%arg0: i32) -> (i32, i32) {
    %c0_i32 = arith.constant 0 : i32
    %c0_i32_0 = arith.constant 0 : i32
    %c0_i32_1 = arith.constant 0 : i32
    return %c0_i32, %c0_i32_0 : i32, i32
  }
  func.func @transform_6(%arg0: i32) -> (i32, i32) {
    %c0_i32 = arith.constant 0 : i32
    %c0_i32_0 = arith.constant 0 : i32
    %c0_i32_1 = arith.constant 0 : i32
    return %c0_i32, %c0_i32_0 : i32, i32
  }
  func.func @transform_7(%arg0: i32) -> (i32, i32) {
    %c0_i32 = arith.constant 0 : i32
    %c0_i32_0 = arith.constant 0 : i32
    %c0_i32_1 = arith.constant 0 : i32
    return %c0_i32, %c0_i32_0 : i32, i32
  }
  func.func @transform_8(%arg0: i32) -> (i32, i32) {
    %c0_i32 = arith.constant 0 : i32
    %c0_i32_0 = arith.constant 0 : i32
    %c0_i32_1 = arith.constant 0 : i32
    return %c0_i32, %c0_i32_0 : i32, i32
  }
  func.func @transform_9(%arg0: i32) -> (i32, i32) {
    %c0_i32 = arith.constant 0 : i32
    %c0_i32_0 = arith.constant 0 : i32
    %c0_i32_1 = arith.constant 0 : i32
    return %c0_i32, %c0_i32_0 : i32, i32
  }
}

</mosaic_0001>

<bundles_post_ra>
// kernel: tpu_custom_call.1
= control target key start
LH: loop header
LB: loop body
LE: loop exit
PB: predicated region body
PF: predicated region fallthrough
CT: control target
= control target key end

     0   :  { %14 = vsyncpa [#allocation5], 0  ;;  %s4802_s0 = inlined_call_operand.vmem [shape: f32[96,3], index: 0, kind: input, shape index: {}]   ;;  %s4803_s1 = inlined_call_operand.vmem [shape: f32[3,128], index: 1, kind: input, shape index: {}]   ;;  %s4804_s2 = inlined_call_operand.vmem [shape: f32[1,128], index: 2, kind: input, shape index: {}]   ;;  %s4805_s3 = inlined_call_operand.vmem [shape: f32[32,128], index: 3, kind: input, shape index: {}]   ;;  %s4806_s4 = inlined_call_operand.vmem [shape: f32[32,128], index: 4, kind: input, shape index: {}]   ;;  %s4807_s5 = inlined_call_operand.vmem [shape: f32[1,128], index: 5, kind: input, shape index: {}]   ;;  %s4808_s6 = inlined_call_operand.vmem [shape: f32[32,128], index: 6, kind: input, shape index: {}]   ;;  %s4809_s7 = inlined_call_operand.hbm [shape: f32[32,128], index: 7, kind: input, shape index: {}]   ;;  %s4810_s8 = inlined_call_operand.vmem [shape: f32[1,128], index: 8, kind: input, shape index: {}]   ;;  %s4811_s9 = inlined_call_operand.hbm [shape: f32[96,128], index: 9, kind: output, shape index: {}]  }
   0x1   :  { %15 = vsyncpa [#allocation6], 0  ;;  %s4104_s30 = smov [#allocation4]   ;;  %s4056_s13 = scalar_lea.hbm %s4809_s7, 512 }
   0x2   :  { %s35_s10 = sshll.u32 %s4104_s30, 4  ;;  %p4057_p0 = scmp.ne.s32.totalorder %s4809_s7, %s4056_s13  ;;  %s36_s10 = int_to_ptr.vmem [resolvable:$true] %s35_s10 }
   0x3   :  { %p4060_p1 = scmp.lt.u32.totalorder %s4056_s13, %s4809_s7 }
   0x5   :  { %p4062_p2 = pnand %p4060_p1, %p4057_p0 }
   0x7   :  { %4065 = shalt.err (!%p4062_p2)
}
   0x8   :  { %s4066_s18 = scalar_lea.vmem %s36_s10, 512  ;;  %p4071_p4 = scmp.lt.s32.totalorder %s36_s10, %s36_s10 }
   0x9   :  { %p4067_p3 = scmp.ne.s32.totalorder %s36_s10, %s4066_s18  ;;  %p4072_p5 = scmp.lt.s32.totalorder %s4066_s18, %s4066_s18 }
   0xb   :  { %p4073_p6 = por %p4072_p5, %p4071_p4 }
   0xd   :  { %p4074_p7 = pnand %p4073_p6, %p4067_p3 }
   0xf   :  { %4077 = shalt.err (!%p4074_p7)
}
  0x10   :  { %s4105_s19 = smov 128   ;;  %s4106_s20 = smov 8  }
  0x11   :  { %41 = dma.hbm_to_vmem [thread:$0]  %s4809_s7, 512, %s36_s10, [#allocation5], %s4105_s19, %s4105_s19, %s4106_s20  }
  0x12   :  { %4100 = dma.done.wait [#allocation5], 512  }
  0x13   :  { %4101 = vsyncadd [#allocation5], 4294966784  ;;  %vm112_vm0 = vcmask 1042432   ;;  %vm75_vm1 = vcmask 23552   ;;  %v67_v0 = vld [vmem:[%s4803_s1] sm:$0x7]  ;;  %v241_v21 = vlaneseq }
  0x14   :  { %v59_v1 = vld [vmem:[%s4802_s0 + $0x20] sm:$0xff]  ;;  %v60_v2 = vld [vmem:[%s4802_s0 + $0x28] sm:$0xff]  ;;  %3900 = vmatprep.subr.msk.mxu1 %vm112_vm0, %v67_v0  ;;  %v61_v5 = vld [vmem:[%s4802_s0 + $0x30] sm:$0xff]  ;;  %3404 = vmatprep.subr.msk.mxu0 %vm112_vm0, %v67_v0  ;;  %v4107_v7 = vmov 0.0|0.0   ;;  %vm4108_vm2 = vmmov 0   ;;  %v4109_v18 = vmov 0.0  }
  0x15   :  { %3412 = vmatprep.mubr.msk.f32.mxu1 %vm75_vm1, %v59_v1  ;;  %v47_v3 = vld [vmem:[%s4805_s3] sm:$0xff]  ;;  %v48_v4 = vld [vmem:[%s4805_s3 + $0x8] sm:$0xff]  ;;  %3901 = vmatpush3.msk.msra.mxu1 %vm112_vm0, %v67_v0  ;;  %v49_v8 = vld [vmem:[%s4805_s3 + $0x10] sm:$0xff]  ;;  %v242_v26 = vand.u32 127, %v241_v21  ;;  %v4110_v33 = vmov 1.0   ;;  %s4112_s1 = smov 32  }
  0x16   :  { %v4200_v6 = vpack.c.bf16 %v48_v4, %v47_v3  ;;  %3413 = vmatmul.mubr.msk.f32.vlgmr.msra.gmra.mrb[0].mxu1 %vm75_vm1, %v60_v2  ;;  %3740 = vmatprep.subr.bf16.mxu1 %v4107_v7  ;;  %v50_v9 = vld [vmem:[%s4805_s3 + $0x18] sm:$0xff]  ;;  %v55_v12 = vld [vmem:[%s4802_s0] sm:$0xff]  ;;  %v56_v13 = vld [vmem:[%s4802_s0 + $0x8] sm:$0xff]  ;;  %vm248_vm6 = vcmask 261120  }
  0x17   :  { %3415 = vmatprep.mubr.msk.f32.mxu1 %vm75_vm1, %v61_v5  ;;  %v62_v10 = vld [vmem:[%s4802_s0 + $0x38] sm:$0xff]  ;;  %v4216_v11 = vpack.c.bf16 %v50_v9, %v49_v8  ;;  %v63_v14 = vld [vmem:[%s4802_s0 + $0x40] sm:$0xff]  ;;  %3405 = vmatpush3.msk.msra.mxu0 %vm112_vm0, %v67_v0  ;;  %v64_v15 = vld [vmem:[%s4802_s0 + $0x48] sm:$0xff]  ;;  %vm243_vm3 = vcmp.ge.s32.totalorder %v242_v26, 64  ;;  %vm244_vm4 = vcmp.lt.s32.totalorder %v242_v26, 96 }
  0x18   :  { %3742 = vmatpush3.bf16.msra.mxu1 %v4200_v6  ;;  %3406 = vmatprep.mubr.msk.f32.mxu0 %vm75_vm1, %v55_v12  ;;  %v65_v16 = vld [vmem:[%s4802_s0 + $0x50] sm:$0xff]  ;;  %v66_v17 = vld [vmem:[%s4802_s0 + $0x58] sm:$0xff]  ;;  %v4276_v29 = vld [vmem:[%s4804_s2] ss:$0 sm:$0xff]  ;;  %s4111_s2 = smov 64  }
  0x19   :  { %3743 = vmatprep.subr.bf16.mxu1 %v4107_v7  ;;  %3758 = vmatprep.subr.bf16.mxu0 %v4107_v7  ;;  %vm245_vm5 = vmand %vm243_vm3, %vm244_vm4  ;;  %v57_v9 = vld [vmem:[%s4802_s0 + $0x10] sm:$0xff] }
  0x1a   :  { %3416 = vmatmul.mubr.msk.f32.gmra.mrb[2].mxu1 %vm75_vm1, %v62_v10  ;;  %3407 = vmatmul.mubr.msk.f32.vlgmr.msra.gmra.mrb[0].mxu0 %vm75_vm1, %v56_v13  ;;  %v4283_v34 = vsel %vm245_vm5, 2.0, %v4110_v33  ;;  %v4287_v43 = vsel %vm245_vm5, -1.0, %v4109_v18  ;;  %v58_v10 = vld [vmem:[%s4802_s0 + $0x18] sm:$0xff] }
  0x1b   :  { %3418 = vmatprep.mubr.msk.f32.mxu1 %vm75_vm1, %v63_v14  ;;  %3760 = vmatpush3.bf16.msra.mxu0 %v4200_v6 }
  0x1c   :  { %3745 = vmatpush3.bf16.msra.mxu1 %v4216_v11  ;;  %3761 = vmatprep.subr.bf16.mxu0 %v4107_v7 }
  0x1d   :  { %3746 = vmatprep.subr.bf16.mxu1 %v4107_v7  ;;  %3409 = vmatprep.mubr.msk.f32.mxu0 %vm75_vm1, %v57_v9 }
  0x1e   :  { %3419 = vmatmul.mubr.msk.f32.gmra.mrb[4].mxu1 %vm75_vm1, %v64_v15  ;;  %3410 = vmatmul.mubr.msk.f32.gmra.mrb[2].mxu0 %vm75_vm1, %v58_v10 }
  0x1f   :  { %3421 = vmatprep.mubr.msk.f32.mxu1 %vm75_vm1, %v65_v16  ;;  %3763 = vmatpush3.bf16.msra.mxu0 %v4216_v11 }
  0x20   :  { %3770 = vmatprep.subr.bf16.mxu0 %v4107_v7  ;;  %3465 = vmatprep.mubr.msk.f32.mxu0 %vm4108_vm2, %v4109_v18 }
  0x22   :  { %3422 = vmatmul.mubr.msk.f32.gmra.mrb[6].mxu1 %vm75_vm1, %v66_v17 }
  0x23   :  { %3432 = vmatprep.mubr.msk.f32.mxu1 %vm4108_vm2, %v4109_v18 }
  0x26   :  { %3433 = vmatmul.mubr.f32.vlgmr.msra.gmra.mrb[8].mxu1 %v4109_v18 }
  0x27   :  { %3748 = vmatpush3.bf16.msra.mxu1 %v4200_v6  ;;  %3443 = vmatprep.mubr.msk.f32.mxu1 %vm4108_vm2, %v4109_v18 }
  0x28   :  { %3749 = vmatprep.subr.bf16.mxu1 %v4107_v7 }
  0x2b   :  { %3751 = vmatpush3.bf16.msra.mxu1 %v4216_v11 }
  0x2c   :  { %3752 = vmatprep.subr.bf16.mxu1 %v4107_v7 }
  0xe9   :  { %v4261_v19 = vpop.f32.mrb[0].mxu1 }
  0xea   :  { %v4263_v20 = vpop.f32.mrb[1].mxu1 }
  0xed   :  { %v4265_v22 = vpop.f32.mrb[2].mxu1  ;;  %v3408_v23 = vpop.f32.mrb[0].mxu0 }
  0xee   :  { %v4267_v24 = vpop.f32.mrb[3].mxu1  ;;  %v182_v25 = vpop.f32.mrb[1].mxu0  ;;  %v188_v55 = vadd.f32 %v3408_v23, %v4276_v29 }
  0xef   :  { %v183_v32 = vadd.f32 %v4276_v29, %v182_v25 }
  0xf1   :  { %v4269_v27 = vpop.f32.mrb[4].mxu1  ;;  %v3411_v15 = vpop.f32.mrb[2].mxu0 }
  0xf2   :  { %v4271_v28 = vpop.f32.mrb[5].mxu1  ;;  %v192_v16 = vpop.f32.mrb[3].mxu0 }
  0xf3   :  { %v193_v21 = vadd.f32 %v4276_v29, %v192_v16 }
  0xf5   :  { %v4278_v30 = vpop.f32.mrb[6].mxu1 }
  0xf6   :  { %v4280_v31 = vpop.f32.mrb[7].mxu1 }
  0xf9   :  { %v318_v35 = vpop.f32.mrb[8].mxu1 }
  0xfa   :  { %v322_v36 = vadd.f32 %v318_v35, %v183_v32  ;;  %v3434_v37 = vpop.f32.mrb[9].mxu1 }
  0xfc   :  { %v323_v38 = vmul.f32 %v322_v36, %v4283_v34 }
  0xfe   :  { %v3167_v39 = vmul.f32 -1.442695, %v323_v38 }
 0x100   :  { %3912 = vpow2.f32 %v3167_v39 }
 0x10a   :  { %v3913_v40 = vpop.eup %3912 }
 0x10b   :  { %v327_v41 = vadd.f32 1.0, %v3913_v40 }
 0x10d   :  { %3914 = vrcp.f32 %v327_v41 }
 0x117   :  { %v3915_v42 = vpop.eup %3914 }
 0x118   :  { %v330_v44 = vmul.f32 %v3915_v42, %v4283_v34 }
 0x11a   :  { %v331_v45 = vadd.f32 %v330_v44, %v4287_v43 }
 0x11c   :  { %334 = vrot.lane.b32.xlu0 %v331_v45, %s4111_s2  ;;  %v332_v48 = vmul.f32 0.0, %v331_v45 }
 0x18e   :  { %v335_v46 = vpop.permute.xlu0 %334 }
 0x18f   :  { %v337_v47 = vmul.f32 %v335_v46, %v331_v45 }
 0x191   :  { %339 = vrot.lane.b32.xlu0 %v337_v47, %s4112_s1 }
 0x203   :  { %v340_v49 = vpop.permute.xlu0 %339 }
 0x204   :  { %v342_v50 = vadd.f32 %v340_v49, %v332_v48 }
 0x206   :  { %3916 = vtanh.f32 %v342_v50 }
 0x210   :  { %v3917_v51 = vpop.eup %3916 }
 0x211   :  { %345 = vrot.lane.b32.xlu1 %v3917_v51, %s4111_s2 }
 0x283   :  { %v346_v52 = vpop.permute.xlu1 %345 }
 0x284   :  { %v348_v53 = vmul.f32 %v346_v52, %v331_v45 }
 0x286   :  { %350 = vrot.lane.b32.xlu1 %v348_v53, %s4112_s1 }
 0x2f8   :  { %v351_v54 = vpop.permute.xlu1 %350 }
 0x2f9   :  { %353 = vst.msk [vmem:[#allocation2] sm:$0xff] %vm248_vm6, %v351_v54  ;;  %3444 = vmatmul.mubr.msk.f32.vlgmr.msra.gmra.mrb[10].mxu1 %vm248_vm6, %v351_v54 }
 0x2fa   :  { %3754 = vmatpush3.bf16.msra.mxu1 %v4200_v6  ;;  %3454 = vmatprep.mubr.msk.f32.mxu1 %vm4108_vm2, %v4109_v18 }
 0x2fb   :  { %3755 = vmatprep.subr.bf16.mxu1 %v4107_v7 }
 0x2fe   :  { %3757 = vmatpush3.bf16.msra.mxu1 %v4216_v11 }
 0x2ff   :  { %3764 = vmatprep.subr.bf16.mxu1 %v4107_v7 }
 0x3cc   :  { %v422_v56 = vpop.f32.mrb[10].mxu1 }
 0x3cd   :  { %v426_v57 = vadd.f32 %v422_v56, %v188_v55  ;;  %v3445_v58 = vpop.f32.mrb[11].mxu1 }
 0x3cf   :  { %v427_v59 = vmul.f32 %v426_v57, %v4283_v34 }
 0x3d1   :  { %v3169_v60 = vmul.f32 -1.442695, %v427_v59 }
 0x3d3   :  { %3918 = vpow2.f32 %v3169_v60 }
 0x3dd   :  { %v3919_v61 = vpop.eup %3918 }
 0x3de   :  { %v431_v62 = vadd.f32 1.0, %v3919_v61 }
 0x3e0   :  { %3920 = vrcp.f32 %v431_v62 }
 0x3ea   :  { %v3921_v63 = vpop.eup %3920 }
 0x3eb   :  { %v434_v0 = vmul.f32 %v3921_v63, %v4283_v34 }
 0x3ed   :  { %v435_v1 = vadd.f32 %v434_v0, %v4287_v43 }
 0x3ef   :  { %438 = vrot.lane.b32.xlu0 %v435_v1, %s4111_s2  ;;  %v436_v4 = vmul.f32 %v435_v1, %v342_v50  ;;  %v198_v50 = vadd.f32 %v3411_v15, %v4276_v29 }
 0x461   :  { %v439_v2 = vpop.permute.xlu0 %438 }
 0x462   :  { %v441_v3 = vmul.f32 %v439_v2, %v435_v1 }
 0x464   :  { %443 = vrot.lane.b32.xlu1 %v441_v3, %s4112_s1 }
 0x4d6   :  { %v444_v5 = vpop.permute.xlu1 %443 }
 0x4d7   :  { %v446_v8 = vadd.f32 %v444_v5, %v436_v4 }
 0x4d9   :  { %3922 = vtanh.f32 %v446_v8 }
 0x4e3   :  { %v3923_v12 = vpop.eup %3922 }
 0x4e4   :  { %449 = vrot.lane.b32.xlu0 %v3923_v12, %s4111_s2 }
 0x556   :  { %v450_v13 = vpop.permute.xlu0 %449 }
 0x557   :  { %v452_v14 = vmul.f32 %v450_v13, %v435_v1 }
 0x559   :  { %454 = vrot.lane.b32.xlu1 %v452_v14, %s4112_s1 }
 0x5cb   :  { %v455_v17 = vpop.permute.xlu1 %454 }
 0x5cc   :  { %457 = vst.msk [vmem:[#allocation2 + $0x8] sm:$0xff] %vm248_vm6, %v455_v17  ;;  %3455 = vmatmul.mubr.msk.f32.vlgmr.msra.gmra.mrb[12].mxu1 %vm248_vm6, %v455_v17 }
 0x5cd   :  { %3766 = vmatpush3.bf16.msra.mxu1 %v4200_v6  ;;  %3476 = vmatprep.mubr.msk.f32.mxu1 %vm4108_vm2, %v4109_v18 }
 0x5ce   :  { %3767 = vmatprep.subr.bf16.mxu1 %v4107_v7 }
 0x5d1   :  { %3769 = vmatpush3.bf16.msra.mxu1 %v4216_v11 }
 0x5d2   :  { %3776 = vmatprep.subr.bf16.mxu1 %v4107_v7 }
 0x69f   :  { %v526_v23 = vpop.f32.mrb[12].mxu1 }
 0x6a0   :  { %v530_v25 = vadd.f32 %v526_v23, %v193_v21  ;;  %v3456_v26 = vpop.f32.mrb[13].mxu1 }
 0x6a2   :  { %v531_v32 = vmul.f32 %v530_v25, %v4283_v34 }
 0x6a4   :  { %v3171_v33 = vmul.f32 -1.442695, %v531_v32 }
 0x6a6   :  { %3924 = vpow2.f32 %v3171_v33 }
 0x6b0   :  { %v3925_v35 = vpop.eup %3924 }
 0x6b1   :  { %v535_v36 = vadd.f32 1.0, %v3925_v35 }
 0x6b3   :  { %3926 = vrcp.f32 %v535_v36 }
 0x6bd   :  { %v3927_v37 = vpop.eup %3926 }
 0x6be   :  { %v538_v38 = vmul.f32 %v3927_v37, %v4283_v34 }
 0x6c0   :  { %v539_v39 = vadd.f32 %v538_v38, %v4287_v43 }
 0x6c2   :  { %542 = vrot.lane.b32.xlu0 %v539_v39, %s4111_s2  ;;  %v540_v42 = vmul.f32 %v539_v39, %v446_v8  ;;  %v203_v8 = vadd.f32 %v4276_v29, %v4263_v20 }
 0x734   :  { %v543_v40 = vpop.permute.xlu0 %542 }
 0x735   :  { %v545_v41 = vmul.f32 %v543_v40, %v539_v39 }
 0x737   :  { %547 = vrot.lane.b32.xlu1 %v545_v41, %s4112_s1 }
 0x7a9   :  { %v548_v44 = vpop.permute.xlu1 %547 }
 0x7aa   :  { %v550_v45 = vadd.f32 %v548_v44, %v540_v42 }
 0x7ac   :  { %3928 = vtanh.f32 %v550_v45 }
 0x7b6   :  { %v3929_v46 = vpop.eup %3928 }
 0x7b7   :  { %553 = vrot.lane.b32.xlu0 %v3929_v46, %s4111_s2 }
 0x829   :  { %v554_v47 = vpop.permute.xlu0 %553 }
 0x82a   :  { %v556_v48 = vmul.f32 %v554_v47, %v539_v39  ;;  %v208_v39 = vadd.f32 %v4261_v19, %v4276_v29 }
 0x82c   :  { %558 = vrot.lane.b32.xlu1 %v556_v48, %s4112_s1 }
 0x89e   :  { %v559_v49 = vpop.permute.xlu1 %558 }
 0x89f   :  { %561 = vst.msk [vmem:[#allocation2 + $0x10] sm:$0xff] %vm248_vm6, %v559_v49  ;;  %3466 = vmatmul.mubr.msk.f32.vlgmr.msra.gmra.mrb[4].mxu0 %vm248_vm6, %v559_v49 }
 0x8a0   :  { %3772 = vmatpush3.bf16.msra.mxu0 %v4200_v6  ;;  %3487 = vmatprep.mubr.msk.f32.mxu0 %vm4108_vm2, %v4109_v18 }
 0x8a1   :  { %3773 = vmatprep.subr.bf16.mxu0 %v4107_v7 }
 0x8a4   :  { %3775 = vmatpush3.bf16.msra.mxu0 %v4216_v11 }
 0x8a5   :  { %3782 = vmatprep.subr.bf16.mxu0 %v4107_v7 }
 0x972   :  { %v630_v51 = vpop.f32.mrb[4].mxu0 }
 0x973   :  { %v634_v52 = vadd.f32 %v630_v51, %v198_v50  ;;  %v3467_v53 = vpop.f32.mrb[5].mxu0 }
 0x975   :  { %v635_v54 = vmul.f32 %v634_v52, %v4283_v34 }
 0x977   :  { %v3173_v55 = vmul.f32 -1.442695, %v635_v54 }
 0x979   :  { %3930 = vpow2.f32 %v3173_v55 }
 0x983   :  { %v3931_v56 = vpop.eup %3930 }
 0x984   :  { %v639_v57 = vadd.f32 1.0, %v3931_v56 }
 0x986   :  { %3932 = vrcp.f32 %v639_v57 }
 0x990   :  { %v3933_v58 = vpop.eup %3932 }
 0x991   :  { %v642_v59 = vmul.f32 %v3933_v58, %v4283_v34 }
 0x993   :  { %v643_v60 = vadd.f32 %v642_v59, %v4287_v43  ;;  %v213_v59 = vadd.f32 %v4276_v29, %v4267_v24 }
 0x995   :  { %646 = vrot.lane.b32.xlu0 %v643_v60, %s4111_s2  ;;  %v644_v63 = vmul.f32 %v643_v60, %v550_v45 }
 0xa07   :  { %v647_v61 = vpop.permute.xlu0 %646 }
 0xa08   :  { %v649_v62 = vmul.f32 %v647_v61, %v643_v60 }
 0xa0a   :  { %651 = vrot.lane.b32.xlu1 %v649_v62, %s4112_s1 }
 0xa7c   :  { %v652_v0 = vpop.permute.xlu1 %651 }
 0xa7d   :  { %v654_v1 = vadd.f32 %v652_v0, %v644_v63 }
 0xa7f   :  { %3934 = vtanh.f32 %v654_v1 }
 0xa89   :  { %v3935_v2 = vpop.eup %3934 }
 0xa8a   :  { %657 = vrot.lane.b32.xlu0 %v3935_v2, %s4111_s2 }
 0xafc   :  { %v658_v3 = vpop.permute.xlu0 %657 }
 0xafd   :  { %v660_v4 = vmul.f32 %v658_v3, %v643_v60 }
 0xaff   :  { %662 = vrot.lane.b32.xlu1 %v660_v4, %s4112_s1 }
 0xb71   :  { %v663_v5 = vpop.permute.xlu1 %662 }
 0xb72   :  { %665 = vst.msk [vmem:[#allocation2 + $0x18] sm:$0xff] %vm248_vm6, %v663_v5  ;;  %3477 = vmatmul.mubr.msk.f32.vlgmr.msra.gmra.mrb[14].mxu1 %vm248_vm6, %v663_v5 }
 0xb73   :  { %3778 = vmatpush3.bf16.msra.mxu1 %v4200_v6  ;;  %3498 = vmatprep.mubr.msk.f32.mxu1 %vm4108_vm2, %v4109_v18 }
 0xb74   :  { %3779 = vmatprep.subr.bf16.mxu1 %v4107_v7 }
 0xb77   :  { %3781 = vmatpush3.bf16.msra.mxu1 %v4216_v11 }
 0xb78   :  { %3788 = vmatprep.subr.bf16.mxu1 %v4107_v7 }
 0xc45   :  { %v734_v9 = vpop.f32.mrb[14].mxu1 }
 0xc46   :  { %v738_v10 = vadd.f32 %v734_v9, %v203_v8  ;;  %v3478_v12 = vpop.f32.mrb[15].mxu1 }
 0xc48   :  { %v739_v13 = vmul.f32 %v738_v10, %v4283_v34 }
 0xc4a   :  { %v3175_v14 = vmul.f32 -1.442695, %v739_v13 }
 0xc4c   :  { %3936 = vpow2.f32 %v3175_v14 }
 0xc56   :  { %v3937_v15 = vpop.eup %3936 }
 0xc57   :  { %v743_v16 = vadd.f32 1.0, %v3937_v15 }
 0xc59   :  { %3938 = vrcp.f32 %v743_v16 }
 0xc63   :  { %v3939_v17 = vpop.eup %3938 }
 0xc64   :  { %v746_v21 = vmul.f32 %v3939_v17, %v4283_v34  ;;  %v218_v17 = vadd.f32 %v4265_v22, %v4276_v29 }
 0xc66   :  { %v747_v23 = vadd.f32 %v746_v21, %v4287_v43 }
 0xc68   :  { %750 = vrot.lane.b32.xlu0 %v747_v23, %s4111_s2  ;;  %v748_v20 = vmul.f32 %v747_v23, %v654_v1 }
 0xcda   :  { %v751_v25 = vpop.permute.xlu0 %750 }
 0xcdb   :  { %v753_v26 = vmul.f32 %v751_v25, %v747_v23 }
 0xcdd   :  { %755 = vrot.lane.b32.xlu1 %v753_v26, %s4112_s1 }
 0xd4f   :  { %v756_v32 = vpop.permute.xlu1 %755 }
 0xd50   :  { %v758_v33 = vadd.f32 %v756_v32, %v748_v20 }
 0xd52   :  { %3940 = vtanh.f32 %v758_v33 }
 0xd5c   :  { %v3941_v35 = vpop.eup %3940 }
 0xd5d   :  { %761 = vrot.lane.b32.xlu0 %v3941_v35, %s4111_s2 }
 0xdcf   :  { %v762_v36 = vpop.permute.xlu0 %761 }
 0xdd0   :  { %v764_v37 = vmul.f32 %v762_v36, %v747_v23 }
 0xdd2   :  { %766 = vrot.lane.b32.xlu1 %v764_v37, %s4112_s1 }
 0xe44   :  { %v767_v38 = vpop.permute.xlu1 %766 }
 0xe45   :  { %769 = vst.msk [vmem:[#allocation2 + $0x20] sm:$0xff] %vm248_vm6, %v767_v38  ;;  %3488 = vmatmul.mubr.msk.f32.vlgmr.msra.gmra.mrb[6].mxu0 %vm248_vm6, %v767_v38 }
 0xe46   :  { %3784 = vmatpush3.bf16.msra.mxu0 %v4200_v6  ;;  %3509 = vmatprep.mubr.msk.f32.mxu0 %vm4108_vm2, %v4109_v18 }
 0xe47   :  { %3785 = vmatprep.subr.bf16.mxu0 %v4107_v7 }
 0xe4a   :  { %3787 = vmatpush3.bf16.msra.mxu0 %v4216_v11 }
 0xe4b   :  { %3794 = vmatprep.subr.bf16.mxu0 %v4107_v7 }
 0xf18   :  { %v838_v40 = vpop.f32.mrb[6].mxu0 }
 0xf19   :  { %v842_v41 = vadd.f32 %v838_v40, %v208_v39  ;;  %v3489_v42 = vpop.f32.mrb[7].mxu0 }
 0xf1b   :  { %v843_v44 = vmul.f32 %v842_v41, %v4283_v34 }
 0xf1d   :  { %v3177_v45 = vmul.f32 -1.442695, %v843_v44 }
 0xf1f   :  { %3942 = vpow2.f32 %v3177_v45 }
 0xf29   :  { %v3943_v46 = vpop.eup %3942 }
 0xf2a   :  { %v847_v47 = vadd.f32 1.0, %v3943_v46 }
 0xf2c   :  { %3944 = vrcp.f32 %v847_v47  ;;  %v223_v47 = vadd.f32 %v4276_v29, %v4271_v28 }
 0xf36   :  { %v3945_v48 = vpop.eup %3944 }
 0xf37   :  { %v850_v49 = vmul.f32 %v3945_v48, %v4283_v34 }
 0xf39   :  { %v851_v50 = vadd.f32 %v850_v49, %v4287_v43 }
 0xf3b   :  { %854 = vrot.lane.b32.xlu0 %v851_v50, %s4111_s2  ;;  %v852_v19 = vmul.f32 %v851_v50, %v758_v33 }
 0xfad   :  { %v855_v51 = vpop.permute.xlu0 %854 }
 0xfae   :  { %v857_v52 = vmul.f32 %v855_v51, %v851_v50 }
 0xfb0   :  { %859 = vrot.lane.b32.xlu1 %v857_v52, %s4112_s1 }
0x1022   :  { %v860_v53 = vpop.permute.xlu1 %859 }
0x1023   :  { %v862_v54 = vadd.f32 %v860_v53, %v852_v19 }
0x1025   :  { %3946 = vtanh.f32 %v862_v54 }
0x102f   :  { %v3947_v55 = vpop.eup %3946 }
0x1030   :  { %865 = vrot.lane.b32.xlu0 %v3947_v55, %s4111_s2 }
0x10a2   :  { %v866_v56 = vpop.permute.xlu0 %865 }
0x10a3   :  { %v868_v57 = vmul.f32 %v866_v56, %v851_v50 }
0x10a5   :  { %870 = vrot.lane.b32.xlu1 %v868_v57, %s4112_s1 }
0x1117   :  { %v871_v58 = vpop.permute.xlu1 %870 }
0x1118   :  { %873 = vst.msk [vmem:[#allocation2 + $0x28] sm:$0xff] %vm248_vm6, %v871_v58  ;;  %3499 = vmatmul.mubr.msk.f32.vlgmr.msra.gmra.mrb[16].mxu1 %vm248_vm6, %v871_v58 }
0x1119   :  { %3790 = vmatpush3.bf16.msra.mxu1 %v4200_v6  ;;  %3520 = vmatprep.mubr.msk.f32.mxu1 %vm4108_vm2, %v4109_v18 }
0x111a   :  { %3791 = vmatprep.subr.bf16.mxu1 %v4107_v7 }
0x111d   :  { %3793 = vmatpush3.bf16.msra.mxu1 %v4216_v11 }
0x111e   :  { %3800 = vmatprep.subr.bf16.mxu1 %v4107_v7 }
0x11eb   :  { %v942_v60 = vpop.f32.mrb[16].mxu1 }
0x11ec   :  { %v946_v61 = vadd.f32 %v942_v60, %v213_v59  ;;  %v3500_v62 = vpop.f32.mrb[17].mxu1 }
0x11ee   :  { %v947_v63 = vmul.f32 %v946_v61, %v4283_v34 }
0x11f0   :  { %v3179_v0 = vmul.f32 -1.442695, %v947_v63 }
0x11f2   :  { %3948 = vpow2.f32 %v3179_v0 }
0x11fc   :  { %v3949_v1 = vpop.eup %3948 }
0x11fd   :  { %v951_v2 = vadd.f32 1.0, %v3949_v1  ;;  %v228_v1 = vadd.f32 %v4269_v27, %v4276_v29 }
0x11ff   :  { %3950 = vrcp.f32 %v951_v2 }
0x1209   :  { %v3951_v3 = vpop.eup %3950 }
0x120a   :  { %v954_v4 = vmul.f32 %v3951_v3, %v4283_v34 }
0x120c   :  { %v955_v5 = vadd.f32 %v954_v4, %v4287_v43 }
0x120e   :  { %958 = vrot.lane.b32.xlu0 %v955_v5, %s4111_s2  ;;  %v956_v24 = vmul.f32 %v955_v5, %v862_v54 }
0x1280   :  { %v959_v8 = vpop.permute.xlu0 %958 }
0x1281   :  { %v961_v9 = vmul.f32 %v959_v8, %v955_v5 }
0x1283   :  { %963 = vrot.lane.b32.xlu1 %v961_v9, %s4112_s1 }
0x12f5   :  { %v964_v10 = vpop.permute.xlu1 %963 }
0x12f6   :  { %v966_v12 = vadd.f32 %v964_v10, %v956_v24 }
0x12f8   :  { %3952 = vtanh.f32 %v966_v12 }
0x1302   :  { %v3953_v13 = vpop.eup %3952 }
0x1303   :  { %969 = vrot.lane.b32.xlu0 %v3953_v13, %s4111_s2 }
0x1375   :  { %v970_v14 = vpop.permute.xlu0 %969 }
0x1376   :  { %v972_v15 = vmul.f32 %v970_v14, %v955_v5 }
0x1378   :  { %974 = vrot.lane.b32.xlu1 %v972_v15, %s4112_s1 }
0x13ea   :  { %v975_v16 = vpop.permute.xlu1 %974 }
0x13eb   :  { %977 = vst.msk [vmem:[#allocation2 + $0x30] sm:$0xff] %vm248_vm6, %v975_v16  ;;  %3510 = vmatmul.mubr.msk.f32.vlgmr.msra.gmra.mrb[8].mxu0 %vm248_vm6, %v975_v16  ;;  %v1510_v16 = vld [vmem:[%s4806_s4] sm:$0xff] }
0x13ec   :  { %3796 = vmatpush3.bf16.msra.mxu0 %v4200_v6  ;;  %3531 = vmatprep.mubr.msk.f32.mxu0 %vm4108_vm2, %v4109_v18 }
0x13ed   :  { %3797 = vmatprep.subr.bf16.mxu0 %v4107_v7 }
0x13f0   :  { %3799 = vmatpush3.bf16.msra.mxu0 %v4216_v11 }
0x13f1   :  { %3806 = vmatprep.subr.bf16.mxu0 %v4107_v7 }
0x14be   :  { %v1046_v21 = vpop.f32.mrb[8].mxu0 }
0x14bf   :  { %v1050_v23 = vadd.f32 %v1046_v21, %v218_v17  ;;  %v3511_v25 = vpop.f32.mrb[9].mxu0  ;;  %v1511_v17 = vld [vmem:[%s4806_s4 + $0x8] sm:$0xff] }
0x14c0   :  { %v3812_v21 = vpack.c.bf16 %v1511_v17, %v1510_v16 }
0x14c1   :  { %v1051_v26 = vmul.f32 %v1050_v23, %v4283_v34 }
0x14c3   :  { %v3181_v20 = vmul.f32 -1.442695, %v1051_v26 }
0x14c5   :  { %3954 = vpow2.f32 %v3181_v20  ;;  %v1512_v20 = vld [vmem:[%s4806_s4 + $0x10] sm:$0xff] }
0x14cf   :  { %v3955_v32 = vpop.eup %3954 }
0x14d0   :  { %v1055_v33 = vadd.f32 1.0, %v3955_v32  ;;  %v1513_v32 = vld [vmem:[%s4806_s4 + $0x18] sm:$0xff] }
0x14d2   :  { %3956 = vrcp.f32 %v1055_v33  ;;  %v3816_v33 = vpack.c.bf16 %v1513_v32, %v1512_v20 }
0x14dc   :  { %v3957_v35 = vpop.eup %3956 }
0x14dd   :  { %v1058_v36 = vmul.f32 %v3957_v35, %v4283_v34 }
0x14df   :  { %v1059_v37 = vadd.f32 %v1058_v36, %v4287_v43  ;;  %v1498_v36 = vld [vmem:[#allocation2] sm:$0xff] }
0x14e1   :  { %1062 = vrot.lane.b32.xlu0 %v1059_v37, %s4111_s2  ;;  %v1060_v22 = vmul.f32 %v1059_v37, %v966_v12 }
0x1553   :  { %v1063_v38 = vpop.permute.xlu0 %1062 }
0x1554   :  { %v1065_v39 = vmul.f32 %v1063_v38, %v1059_v37  ;;  %v1500_v38 = vld [vmem:[#allocation2 + $0x10] sm:$0xff] }
0x1556   :  { %1067 = vrot.lane.b32.xlu1 %v1065_v39, %s4112_s1  ;;  %v1501_v39 = vld [vmem:[#allocation2 + $0x18] sm:$0xff] }
0x15c8   :  { %v1068_v40 = vpop.permute.xlu1 %1067 }
0x15c9   :  { %v1070_v41 = vadd.f32 %v1068_v40, %v1060_v22  ;;  %v1502_v22 = vld [vmem:[#allocation2 + $0x20] sm:$0xff]  ;;  %v1503_v40 = vld [vmem:[#allocation2 + $0x28] sm:$0xff] }
0x15cb   :  { %3958 = vtanh.f32 %v1070_v41 }
0x15d5   :  { %v3959_v42 = vpop.eup %3958 }
0x15d6   :  { %1073 = vrot.lane.b32.xlu0 %v3959_v42, %s4111_s2 }
0x1648   :  { %v1074_v44 = vpop.permute.xlu0 %1073 }
0x1649   :  { %v1076_v45 = vmul.f32 %v1074_v44, %v1059_v37  ;;  %v1499_v37 = vld [vmem:[#allocation2 + $0x8] sm:$0xff] }
0x164b   :  { %1078 = vrot.lane.b32.xlu1 %v1076_v45, %s4112_s1 }
0x16bd   :  { %v1079_v46 = vpop.permute.xlu1 %1078 }
0x16be   :  { %1081 = vst.msk [vmem:[#allocation2 + $0x38] sm:$0xff] %vm248_vm6, %v1079_v46  ;;  %3521 = vmatmul.mubr.msk.f32.vlgmr.msra.gmra.mrb[18].mxu1 %vm248_vm6, %v1079_v46  ;;  %v233_v46 = vadd.f32 %v4276_v29, %v4280_v31 }
0x16bf   :  { %3802 = vmatpush3.bf16.msra.mxu1 %v4200_v6  ;;  %3542 = vmatprep.mubr.msk.f32.mxu1 %vm4108_vm2, %v4109_v18 }
0x16c0   :  { %3803 = vmatprep.subr.bf16.mxu1 %v4107_v7 }
0x16c3   :  { %3805 = vmatpush3.bf16.msra.mxu1 %v4216_v11 }
0x16c4   :  { %3813 = vmatprep.subr.bf16.mxu1 %v3812_v21 }
0x16c5   :  { %v1505_v42 = vld [vmem:[#allocation2 + $0x38] sm:$0xff] }
0x1791   :  { %v1150_v48 = vpop.f32.mrb[18].mxu1 }
0x1792   :  { %v1154_v49 = vadd.f32 %v1150_v48, %v223_v47  ;;  %v3522_v50 = vpop.f32.mrb[19].mxu1 }
0x1794   :  { %v1155_v51 = vmul.f32 %v1154_v49, %v4283_v34 }
0x1796   :  { %v3183_v52 = vmul.f32 -1.442695, %v1155_v51 }
0x1798   :  { %3960 = vpow2.f32 %v3183_v52 }
0x17a2   :  { %v3961_v19 = vpop.eup %3960 }
0x17a3   :  { %v1159_v53 = vadd.f32 1.0, %v3961_v19 }
0x17a5   :  { %3962 = vrcp.f32 %v1159_v53 }
0x17af   :  { %v3963_v54 = vpop.eup %3962 }
0x17b0   :  { %v1162_v55 = vmul.f32 %v3963_v54, %v4283_v34 }
0x17b2   :  { %v1163_v56 = vadd.f32 %v1162_v55, %v4287_v43 }
0x17b4   :  { %1166 = vrot.lane.b32.xlu0 %v1163_v56, %s4111_s2  ;;  %v1164_v28 = vmul.f32 %v1163_v56, %v1070_v41  ;;  %v1504_v41 = vld [vmem:[#allocation2 + $0x30] sm:$0xff] }
0x1826   :  { %v1167_v57 = vpop.permute.xlu0 %1166 }
0x1827   :  { %v1169_v58 = vmul.f32 %v1167_v57, %v1163_v56 }
0x1829   :  { %1171 = vrot.lane.b32.xlu1 %v1169_v58, %s4112_s1 }
0x189b   :  { %v1172_v59 = vpop.permute.xlu1 %1171 }
0x189c   :  { %v1174_v60 = vadd.f32 %v1172_v59, %v1164_v28 }
0x189e   :  { %3964 = vtanh.f32 %v1174_v60 }
0x18a8   :  { %v3965_v61 = vpop.eup %3964 }
0x18a9   :  { %1177 = vrot.lane.b32.xlu0 %v3965_v61, %s4111_s2 }
0x191b   :  { %v1178_v62 = vpop.permute.xlu0 %1177 }
0x191c   :  { %v1180_v63 = vmul.f32 %v1178_v62, %v1163_v56 }
0x191e   :  { %1182 = vrot.lane.b32.xlu1 %v1180_v63, %s4112_s1 }
0x1990   :  { %v1183_v0 = vpop.permute.xlu1 %1182 }
0x1991   :  { %1185 = vst.msk [vmem:[#allocation2 + $0x40] sm:$0xff] %vm248_vm6, %v1183_v0  ;;  %3532 = vmatmul.mubr.msk.f32.vlgmr.msra.gmra.mrb[10].mxu0 %vm248_vm6, %v1183_v0 }
0x1992   :  { %3808 = vmatpush3.bf16.msra.mxu0 %v4200_v6  ;;  %3553 = vmatprep.mubr.msk.f32.mxu0 %vm4108_vm2, %v4109_v18 }
0x1993   :  { %3809 = vmatprep.subr.bf16.mxu0 %v4107_v7 }
0x1996   :  { %3811 = vmatpush3.bf16.msra.mxu0 %v4216_v11 }
0x1997   :  { %3820 = vmatprep.subr.bf16.mxu0 %v4107_v7 }
0x1998   :  { %v1506_v44 = vld [vmem:[#allocation2 + $0x40] sm:$0xff] }
0x1a64   :  { %v1254_v2 = vpop.f32.mrb[10].mxu0 }
0x1a65   :  { %v1258_v3 = vadd.f32 %v1254_v2, %v228_v1  ;;  %v3533_v4 = vpop.f32.mrb[11].mxu0 }
0x1a67   :  { %v1259_v5 = vmul.f32 %v1258_v3, %v4283_v34 }
0x1a69   :  { %v3185_v8 = vmul.f32 -1.442695, %v1259_v5 }
0x1a6b   :  { %3966 = vpow2.f32 %v3185_v8  ;;  %v51_v8 = vld [vmem:[%s4808_s6] sm:$0xff] }
0x1a75   :  { %v3967_v6 = vpop.eup %3966 }
0x1a76   :  { %v1263_v9 = vadd.f32 1.0, %v3967_v6  ;;  %v52_v6 = vld [vmem:[%s4808_s6 + $0x8] sm:$0xff] }
0x1a78   :  { %3968 = vrcp.f32 %v1263_v9  ;;  %v4518_v9 = vpack.c.bf16 %v52_v6, %v51_v8 }
0x1a82   :  { %v3969_v24 = vpop.eup %3968 }
0x1a83   :  { %v1266_v10 = vmul.f32 %v3969_v24, %v4283_v34  ;;  %v53_v24 = vld [vmem:[%s4808_s6 + $0x10] sm:$0xff] }
0x1a85   :  { %v1267_v11 = vadd.f32 %v1266_v10, %v4287_v43  ;;  %v54_v10 = vld [vmem:[%s4808_s6 + $0x18] sm:$0xff] }
0x1a87   :  { %1270 = vrot.lane.b32.xlu0 %v1267_v11, %s4111_s2  ;;  %v1268_v27 = vmul.f32 %v1267_v11, %v1174_v60 }
0x1af9   :  { %v1271_v12 = vpop.permute.xlu0 %1270 }
0x1afa   :  { %v1273_v13 = vmul.f32 %v1271_v12, %v1267_v11 }
0x1afc   :  { %1275 = vrot.lane.b32.xlu1 %v1273_v13, %s4112_s1 }
0x1b6e   :  { %v1276_v14 = vpop.permute.xlu1 %1275 }
0x1b6f   :  { %v4452_v15 = vadd.f32 %v1276_v14, %v1268_v27 }
0x1b71   :  { %3970 = vtanh.f32 %v4452_v15 }
0x1b7b   :  { %v3971_v23 = vpop.eup %3970 }
0x1b7c   :  { %1281 = vrot.lane.b32.xlu0 %v3971_v23, %s4111_s2  ;;  %v4554_v23 = vld [vmem:[%s4807_s5] ss:$0 sm:$0xff] }
0x1bee   :  { %v1282_v25 = vpop.permute.xlu0 %1281 }
0x1bef   :  { %v1284_v26 = vmul.f32 %v1282_v25, %v1267_v11  ;;  %v4528_v11 = vpack.c.bf16 %v54_v10, %v53_v24 }
0x1bf1   :  { %1286 = vrot.lane.b32.xlu1 %v1284_v26, %s4112_s1 }
0x1c63   :  { %v1287_v35 = vpop.permute.xlu1 %1286 }
0x1c64   :  { %1289 = vst.msk [vmem:[#allocation2 + $0x48] sm:$0xff] %vm248_vm6, %v1287_v35  ;;  %3543 = vmatmul.mubr.msk.f32.vlgmr.msra.gmra.mrb[20].mxu1 %vm248_vm6, %v1287_v35 }
0x1c65   :  { %3815 = vmatpush3.bf16.msra.mxu1 %v3812_v21  ;;  %3564 = vmatprep.mubr.msk.f32.mxu1 %vm248_vm6, %v1498_v36 }
0x1c66   :  { %3817 = vmatprep.subr.bf16.mxu1 %v3816_v33 }
0x1c69   :  { %3819 = vmatpush3.bf16.msra.mxu1 %v3816_v33 }
0x1c6a   :  { %3838 = vmatprep.subr.bf16.mxu1 %v4107_v7 }
0x1c6b   :  { %v1507_v45 = vld [vmem:[#allocation2 + $0x48] sm:$0xff] }
0x1c6c   :  { %3565 = vmatmul.mubr.msk.f32.vlgmr.msra.gmra.mrb[22].mxu1 %vm248_vm6, %v1499_v37 }
0x1c6d   :  { %3567 = vmatprep.mubr.msk.f32.mxu1 %vm248_vm6, %v1500_v38  ;;  %3840 = vmatpush3.bf16.msra.mxu1 %v4518_v9 }
0x1c6e   :  { %3841 = vmatprep.subr.bf16.mxu1 %v4107_v7 }
0x1c70   :  { %3568 = vmatmul.mubr.msk.f32.gmra.mrb[24].mxu1 %vm248_vm6, %v1501_v39 }
0x1c71   :  { %3570 = vmatprep.mubr.msk.f32.mxu1 %vm248_vm6, %v1502_v22  ;;  %3843 = vmatpush3.bf16.msra.mxu1 %v4528_v11 }
0x1c72   :  { %3850 = vmatprep.subr.bf16.mxu1 %v4107_v7 }
0x1c74   :  { %3571 = vmatmul.mubr.msk.f32.gmra.mrb[26].mxu1 %vm248_vm6, %v1503_v40 }
0x1c75   :  { %3573 = vmatprep.mubr.msk.f32.mxu1 %vm248_vm6, %v1504_v41 }
0x1c78   :  { %3574 = vmatmul.mubr.msk.f32.gmra.mrb[28].mxu1 %vm248_vm6, %v1505_v42 }
0x1c79   :  { %3576 = vmatprep.mubr.msk.f32.mxu1 %vm248_vm6, %v1506_v44 }
0x1c7c   :  { %3577 = vmatmul.mubr.msk.f32.gmra.mrb[30].mxu1 %vm248_vm6, %v1507_v45 }
0x1d37   :  { %v1358_v47 = vpop.f32.mrb[20].mxu1 }
0x1d38   :  { %v1362_v48 = vadd.f32 %v1358_v47, %v233_v46  ;;  %v3544_v49 = vpop.f32.mrb[21].mxu1 }
0x1d3a   :  { %v1363_v50 = vmul.f32 %v1362_v48, %v4283_v34 }
0x1d3c   :  { %v3187_v51 = vmul.f32 -1.442695, %v1363_v50 }
0x1d3e   :  { %3972 = vpow2.f32 %v3187_v51 }
0x1d3f   :  { %v4485_v52 = vpop.f32.mrb[22].mxu1 }
0x1d40   :  { %v1623_v19 = vpop.f32.mrb[23].mxu1  ;;  %v1629_v48 = vadd.f32 %v4485_v52, %v4554_v23 }
0x1d41   :  { %v1624_v25 = vadd.f32 %v4554_v23, %v1623_v19 }
0x1d43   :  { %v4487_v53 = vpop.f32.mrb[24].mxu1 }
0x1d44   :  { %v4489_v54 = vpop.f32.mrb[25].mxu1 }
0x1d47   :  { %v4491_v55 = vpop.f32.mrb[26].mxu1 }
0x1d48   :  { %v3973_v56 = vpop.eup %3972  ;;  %v4493_v57 = vpop.f32.mrb[27].mxu1 }
0x1d49   :  { %v1367_v31 = vadd.f32 1.0, %v3973_v56 }
0x1d4b   :  { %3974 = vrcp.f32 %v1367_v31  ;;  %v4495_v58 = vpop.f32.mrb[28].mxu1 }
0x1d4c   :  { %v4497_v28 = vpop.f32.mrb[29].mxu1 }
0x1d4f   :  { %v4499_v59 = vpop.f32.mrb[30].mxu1 }
0x1d50   :  { %v4501_v60 = vpop.f32.mrb[31].mxu1 }
0x1d55   :  { %v3975_v61 = vpop.eup %3974 }
0x1d56   :  { %v1370_v62 = vmul.f32 %v3975_v61, %v4283_v34 }
0x1d58   :  { %v1371_v63 = vadd.f32 %v1370_v62, %v4287_v43 }
0x1d5a   :  { %1374 = vrot.lane.b32.xlu0 %v1371_v63, %s4111_s2  ;;  %v1372_v2 = vmul.f32 %v1371_v63, %v4452_v15  ;;  %v238_v15 = vadd.f32 %v4278_v30, %v4276_v29 }
0x1dcc   :  { %v1375_v0 = vpop.permute.xlu0 %1374 }
0x1dcd   :  { %v1377_v1 = vmul.f32 %v1375_v0, %v1371_v63 }
0x1dcf   :  { %1379 = vrot.lane.b32.xlu1 %v1377_v1, %s4112_s1 }
0x1e41   :  { %v1380_v3 = vpop.permute.xlu1 %1379 }
0x1e42   :  { %v4508_v4 = vadd.f32 %v1380_v3, %v1372_v2 }
0x1e44   :  { %3976 = vtanh.f32 %v4508_v4 }
0x1e4e   :  { %v3977_v5 = vpop.eup %3976 }
0x1e4f   :  { %1385 = vrot.lane.b32.xlu0 %v3977_v5, %s4111_s2 }
0x1ec1   :  { %v1386_v12 = vpop.permute.xlu0 %1385 }
0x1ec2   :  { %v1388_v13 = vmul.f32 %v1386_v12, %v1371_v63 }
0x1ec4   :  { %1390 = vrot.lane.b32.xlu1 %v1388_v13, %s4112_s1 }
0x1f36   :  { %v1391_v27 = vpop.permute.xlu1 %1390 }
0x1f37   :  { %1393 = vst.msk [vmem:[#allocation2 + $0x50] sm:$0xff] %vm248_vm6, %v1391_v27  ;;  %3554 = vmatmul.mubr.msk.f32.vlgmr.msra.gmra.mrb[12].mxu0 %vm248_vm6, %v1391_v27 }
0x1f38   :  { %3822 = vmatpush3.bf16.msra.mxu0 %v4518_v9  ;;  %3590 = vmatprep.mubr.msk.f32.mxu0 %vm4108_vm2, %v4109_v18 }
0x1f39   :  { %3823 = vmatprep.subr.bf16.mxu0 %v4107_v7 }
0x1f3c   :  { %3825 = vmatpush3.bf16.msra.mxu0 %v4528_v11 }
0x1f3d   :  { %3826 = vmatprep.subr.bf16.mxu0 %v4107_v7 }
0x1f3e   :  { %v1508_v14 = vld [vmem:[#allocation2 + $0x50] sm:$0xff] }
0x1f3f   :  { %3591 = vmatmul.mubr.f32.vlgmr.msra.gmra.mrb[14].mxu0 %v4109_v18  ;;  %3579 = vmatprep.mubr.msk.f32.mxu1 %vm248_vm6, %v1508_v14 }
0x1f40   :  { %3828 = vmatpush3.bf16.msra.mxu0 %v4518_v9  ;;  %3601 = vmatprep.mubr.msk.f32.mxu0 %vm4108_vm2, %v4109_v18 }
0x1f41   :  { %3829 = vmatprep.subr.bf16.mxu0 %v4107_v7 }
0x1f44   :  { %3831 = vmatpush3.bf16.msra.mxu0 %v4528_v11 }
0x1f45   :  { %3832 = vmatprep.subr.bf16.mxu0 %v4107_v7 }
0x200a   :  { %v1462_v16 = vpop.f32.mrb[12].mxu0 }
0x200b   :  { %v1466_v17 = vadd.f32 %v1462_v16, %v238_v15  ;;  %v3555_v21 = vpop.f32.mrb[13].mxu0 }
0x200d   :  { %v1467_v52 = vmul.f32 %v1466_v17, %v4283_v34 }
0x200f   :  { %v3189_v3 = vmul.f32 -1.442695, %v1467_v52 }
0x2012   :  { %v1748_v26 = vpop.f32.mrb[14].mxu0 }
0x2013   :  { %v1752_v20 = vadd.f32 %v1748_v26, %v1624_v25  ;;  %v3592_v32 = vpop.f32.mrb[15].mxu0 }
0x2015   :  { %v1753_v33 = vmul.f32 %v1752_v20, %v4283_v34 }
0x2017   :  { %v3203_v35 = vmul.f32 -1.442695, %v1753_v33 }
0x2019   :  { %3978 = vpow2.f32 %v3203_v35 }
0x2023   :  { %v3979_v36 = vpop.eup %3978 }
0x2024   :  { %v1757_v37 = vadd.f32 1.0, %v3979_v36 }
0x2026   :  { %3980 = vrcp.f32 %v1757_v37  ;;  %v1634_v37 = vadd.f32 %v4554_v23, %v4489_v54 }
0x2030   :  { %v3981_v29 = vpop.eup %3980 }
0x2031   :  { %v1760_v30 = vmul.f32 %v3981_v29, %v4283_v34 }
0x2033   :  { %v1761_v38 = vadd.f32 %v1760_v30, %v4287_v43 }
0x2035   :  { %1764 = vrot.lane.b32.xlu0 %v1761_v38, %s4111_s2  ;;  %v1762_v40 = vmul.f32 0.0, %v1761_v38 }
0x20a7   :  { %v1765_v39 = vpop.permute.xlu0 %1764 }
0x20a8   :  { %v1767_v22 = vmul.f32 %v1765_v39, %v1761_v38 }
0x20aa   :  { %1769 = vrot.lane.b32.xlu1 %v1767_v22, %s4112_s1 }
0x211c   :  { %v1770_v41 = vpop.permute.xlu1 %1769 }
0x211d   :  { %v1772_v42 = vadd.f32 %v1770_v41, %v1762_v40 }
0x211f   :  { %3982 = vtanh.f32 %v1772_v42 }
0x2129   :  { %v3983_v44 = vpop.eup %3982 }
0x212a   :  { %1775 = vrot.lane.b32.xlu0 %v3983_v44, %s4111_s2 }
0x219c   :  { %v1776_v45 = vpop.permute.xlu0 %1775 }
0x219d   :  { %v1778_v46 = vmul.f32 %v1776_v45, %v1761_v38 }
0x219f   :  { %1780 = vrot.lane.b32.xlu1 %v1778_v46, %s4112_s1 }
0x2211   :  { %v1781_v47 = vpop.permute.xlu1 %1780 }
0x2212   :  { %1783 = vst.msk [vmem:[#allocation3] sm:$0xff] %vm248_vm6, %v1781_v47  ;;  %3602 = vmatmul.mubr.msk.f32.vlgmr.msra.gmra.mrb[16].mxu0 %vm248_vm6, %v1781_v47 }
0x2213   :  { %3834 = vmatpush3.bf16.msra.mxu0 %v4518_v9  ;;  %3612 = vmatprep.mubr.msk.f32.mxu0 %vm4108_vm2, %v4109_v18 }
0x2214   :  { %3835 = vmatprep.subr.bf16.mxu0 %v4107_v7 }
0x2217   :  { %3837 = vmatpush3.bf16.msra.mxu0 %v4528_v11 }
0x2218   :  { %3844 = vmatprep.subr.bf16.mxu0 %v4107_v7 }
0x22e5   :  { %v1852_v49 = vpop.f32.mrb[16].mxu0 }
0x22e6   :  { %v1856_v50 = vadd.f32 %v1852_v49, %v1629_v48  ;;  %v3603_v51 = vpop.f32.mrb[17].mxu0 }
0x22e8   :  { %v1857_v19 = vmul.f32 %v1856_v50, %v4283_v34 }
0x22ea   :  { %v3205_v56 = vmul.f32 -1.442695, %v1857_v19 }
0x22ec   :  { %3984 = vpow2.f32 %v3205_v56 }
0x22f6   :  { %v3985_v31 = vpop.eup %3984 }
0x22f7   :  { %v1861_v61 = vadd.f32 1.0, %v3985_v31 }
0x22f9   :  { %3986 = vrcp.f32 %v1861_v61 }
0x22fa   :  { %3988 = vpow2.f32 %v3189_v3 }
0x2303   :  { %v3987_v62 = vpop.eup %3986 }
0x2304   :  { %v1864_v63 = vmul.f32 %v3987_v62, %v4283_v34  ;;  %v3989_v5 = vpop.eup %3988 }
0x2305   :  { %v1471_v8 = vadd.f32 1.0, %v3989_v5 }
0x2306   :  { %v1865_v0 = vadd.f32 %v1864_v63, %v4287_v43  ;;  %v1639_v63 = vadd.f32 %v4487_v53, %v4554_v23 }
0x2307   :  { %3990 = vrcp.f32 %v1471_v8 }
0x2308   :  { %1868 = vrot.lane.b32.xlu0 %v1865_v0, %s4111_s2  ;;  %v1866_v6 = vmul.f32 %v1865_v0, %v1772_v42 }
0x2311   :  { %v3991_v12 = vpop.eup %3990 }
0x2312   :  { %v1474_v13 = vmul.f32 %v3991_v12, %v4283_v34 }
0x2314   :  { %v1475_v14 = vadd.f32 %v1474_v13, %v4287_v43 }
0x2316   :  { %v1476_v26 = vmul.f32 %v1475_v14, %v4508_v4 }
0x237a   :  { %v1869_v1 = vpop.permute.xlu0 %1868 }
0x237b   :  { %v1871_v2 = vmul.f32 %v1869_v1, %v1865_v0 }
0x237d   :  { %1873 = vrot.lane.b32.xlu1 %v1871_v2, %s4112_s1 }
0x23ef   :  { %v1874_v24 = vpop.permute.xlu1 %1873 }
0x23f0   :  { %v1876_v10 = vadd.f32 %v1874_v24, %v1866_v6 }
0x23f2   :  { %3992 = vtanh.f32 %v1876_v10 }
0x23fc   :  { %v3993_v27 = vpop.eup %3992 }
0x23fd   :  { %1879 = vrot.lane.b32.xlu0 %v3993_v27, %s4111_s2 }
0x2401   :  { %1478 = vrot.lane.b32.xlu0 %v1475_v14, %s4111_s2 }
0x246f   :  { %v1880_v15 = vpop.permute.xlu0 %1879 }
0x2470   :  { %v1882_v16 = vmul.f32 %v1880_v15, %v1865_v0 }
0x2472   :  { %1884 = vrot.lane.b32.xlu1 %v1882_v16, %s4112_s1 }
0x2473   :  { %v1479_v17 = vpop.permute.xlu0 %1478 }
0x2474   :  { %v1481_v21 = vmul.f32 %v1479_v17, %v1475_v14 }
0x2476   :  { %1483 = vrot.lane.b32.xlu0 %v1481_v21, %s4112_s1 }
0x24e4   :  { %v1885_v25 = vpop.permute.xlu1 %1884 }
0x24e5   :  { %1887 = vst.msk [vmem:[#allocation3 + $0x8] sm:$0xff] %vm248_vm6, %v1885_v25  ;;  %3613 = vmatmul.mubr.msk.f32.vlgmr.msra.gmra.mrb[18].mxu0 %vm248_vm6, %v1885_v25  ;;  %v1644_v25 = vadd.f32 %v4554_v23, %v4493_v57 }
0x24e6   :  { %3846 = vmatpush3.bf16.msra.mxu0 %v4518_v9  ;;  %3634 = vmatprep.mubr.msk.f32.mxu0 %vm4108_vm2, %v4109_v18 }
0x24e7   :  { %3847 = vmatprep.subr.bf16.mxu0 %v4107_v7 }
0x24e8   :  { %v1484_v20 = vpop.permute.xlu0 %1483 }
0x24e9   :  { %v1486_v32 = vadd.f32 %v1484_v20, %v1476_v26 }
0x24ea   :  { %3849 = vmatpush3.bf16.msra.mxu0 %v4528_v11 }
0x24eb   :  { %3994 = vtanh.f32 %v1486_v32  ;;  %3856 = vmatprep.subr.bf16.mxu0 %v4107_v7 }
0x24f5   :  { %v3995_v33 = vpop.eup %3994 }
0x24f6   :  { %1489 = vrot.lane.b32.xlu0 %v3995_v33, %s4111_s2 }
0x2568   :  { %v1490_v35 = vpop.permute.xlu0 %1489 }
0x2569   :  { %v1492_v36 = vmul.f32 %v1490_v35, %v1475_v14 }
0x256b   :  { %1494 = vrot.lane.b32.xlu0 %v1492_v36, %s4112_s1 }
0x25b8   :  { %v1956_v4 = vpop.f32.mrb[18].mxu0 }
0x25b9   :  { %v1960_v29 = vadd.f32 %v1956_v4, %v1634_v37  ;;  %v3614_v30 = vpop.f32.mrb[19].mxu0 }
0x25bb   :  { %v1961_v38 = vmul.f32 %v1960_v29, %v4283_v34 }
0x25bd   :  { %v3207_v39 = vmul.f32 -1.442695, %v1961_v38 }
0x25bf   :  { %3996 = vpow2.f32 %v3207_v39 }
0x25c9   :  { %v3997_v22 = vpop.eup %3996 }
0x25ca   :  { %v1965_v40 = vadd.f32 1.0, %v3997_v22 }
0x25cc   :  { %3998 = vrcp.f32 %v1965_v40 }
0x25d6   :  { %v3999_v41 = vpop.eup %3998 }
0x25d7   :  { %v1968_v42 = vmul.f32 %v3999_v41, %v4283_v34 }
0x25d9   :  { %v1969_v44 = vadd.f32 %v1968_v42, %v4287_v43 }
0x25db   :  { %1972 = vrot.lane.b32.xlu1 %v1969_v44, %s4111_s2  ;;  %v1970_v50 = vmul.f32 %v1969_v44, %v1876_v10 }
0x25dd   :  { %v1495_v45 = vpop.permute.xlu0 %1494 }
0x25de   :  { %1497 = vst.msk [vmem:[#allocation2 + $0x58] sm:$0xff] %vm248_vm6, %v1495_v45 }
0x25e5   :  { %v1509_v54 = vld [vmem:[#allocation2 + $0x58] sm:$0xff] }
0x25e6   :  { %3580 = vmatmul.mubr.msk.f32.gmra.mrb[32].mxu1 %vm248_vm6, %v1509_v54  ;;  %v1649_v54 = vadd.f32 %v4491_v55, %v4554_v23 }
0x25e7   :  { %3623 = vmatprep.mubr.msk.f32.mxu1 %vm4108_vm2, %v4109_v18 }
0x264d   :  { %v1973_v46 = vpop.permute.xlu1 %1972 }
0x264e   :  { %v1975_v47 = vmul.f32 %v1973_v46, %v1969_v44 }
0x2650   :  { %1977 = vrot.lane.b32.xlu1 %v1975_v47, %s4112_s1 }
0x26b9   :  { %v4608_v48 = vpop.f32.mrb[32].mxu1 }
0x26ba   :  { %v4610_v49 = vpop.f32.mrb[33].mxu1 }
0x26c2   :  { %v1978_v51 = vpop.permute.xlu1 %1977 }
0x26c3   :  { %v1980_v19 = vadd.f32 %v1978_v51, %v1970_v50 }
0x26c5   :  { %4000 = vtanh.f32 %v1980_v19 }
0x26cf   :  { %v4001_v56 = vpop.eup %4000 }
0x26d0   :  { %1983 = vrot.lane.b32.xlu1 %v4001_v56, %s4111_s2 }
0x2742   :  { %v1984_v31 = vpop.permute.xlu1 %1983 }
0x2743   :  { %v1986_v61 = vmul.f32 %v1984_v31, %v1969_v44 }
0x2745   :  { %1988 = vrot.lane.b32.xlu1 %v1986_v61, %s4112_s1 }
0x27b7   :  { %v1989_v62 = vpop.permute.xlu1 %1988 }
0x27b8   :  { %1991 = vst.msk [vmem:[#allocation3 + $0x10] sm:$0xff] %vm248_vm6, %v1989_v62  ;;  %3624 = vmatmul.mubr.msk.f32.vlgmr.msra.gmra.mrb[34].mxu1 %vm248_vm6, %v1989_v62 }
0x27b9   :  { %3852 = vmatpush3.bf16.msra.mxu1 %v4518_v9  ;;  %3645 = vmatprep.mubr.msk.f32.mxu1 %vm4108_vm2, %v4109_v18 }
0x27ba   :  { %3853 = vmatprep.subr.bf16.mxu1 %v4107_v7 }
0x27bd   :  { %3855 = vmatpush3.bf16.msra.mxu1 %v4528_v11 }
0x27be   :  { %3862 = vmatprep.subr.bf16.mxu1 %v4107_v7 }
0x288b   :  { %v2060_v0 = vpop.f32.mrb[34].mxu1 }
0x288c   :  { %v2064_v1 = vadd.f32 %v2060_v0, %v1639_v63  ;;  %v3625_v2 = vpop.f32.mrb[35].mxu1 }
0x288e   :  { %v2065_v52 = vmul.f32 %v2064_v1, %v4283_v34 }
0x2890   :  { %v3209_v3 = vmul.f32 -1.442695, %v2065_v52 }
0x2892   :  { %4002 = vpow2.f32 %v3209_v3 }
0x289c   :  { %v4003_v5 = vpop.eup %4002 }
0x289d   :  { %v2069_v8 = vadd.f32 1.0, %v4003_v5 }
0x289f   :  { %4004 = vrcp.f32 %v2069_v8 }
0x28a9   :  { %v4005_v6 = vpop.eup %4004 }
0x28aa   :  { %v2072_v24 = vmul.f32 %v4005_v6, %v4283_v34 }
0x28ac   :  { %v2073_v10 = vadd.f32 %v2072_v24, %v4287_v43  ;;  %v1654_v24 = vadd.f32 %v4554_v23, %v4497_v28 }
0x28ae   :  { %2076 = vrot.lane.b32.xlu0 %v2073_v10, %s4111_s2  ;;  %v2074_v53 = vmul.f32 %v2073_v10, %v1980_v19 }
0x2920   :  { %v2077_v12 = vpop.permute.xlu0 %2076 }
0x2921   :  { %v2079_v13 = vmul.f32 %v2077_v12, %v2073_v10 }
0x2923   :  { %2081 = vrot.lane.b32.xlu1 %v2079_v13, %s4112_s1 }
0x2995   :  { %v2082_v27 = vpop.permute.xlu1 %2081 }
0x2996   :  { %v2084_v14 = vadd.f32 %v2082_v27, %v2074_v53 }
0x2998   :  { %4006 = vtanh.f32 %v2084_v14 }
0x29a2   :  { %v4007_v15 = vpop.eup %4006 }
0x29a3   :  { %2087 = vrot.lane.b32.xlu0 %v4007_v15, %s4111_s2 }
0x2a15   :  { %v2088_v16 = vpop.permute.xlu0 %2087 }
0x2a16   :  { %v2090_v17 = vmul.f32 %v2088_v16, %v2073_v10 }
0x2a18   :  { %2092 = vrot.lane.b32.xlu1 %v2090_v17, %s4112_s1 }
0x2a8a   :  { %v2093_v21 = vpop.permute.xlu1 %2092 }
0x2a8b   :  { %2095 = vst.msk [vmem:[#allocation3 + $0x18] sm:$0xff] %vm248_vm6, %v2093_v21  ;;  %3635 = vmatmul.mubr.msk.f32.vlgmr.msra.gmra.mrb[20].mxu0 %vm248_vm6, %v2093_v21 }
0x2a8c   :  { %3858 = vmatpush3.bf16.msra.mxu0 %v4518_v9  ;;  %3656 = vmatprep.mubr.msk.f32.mxu0 %vm4108_vm2, %v4109_v18 }
0x2a8d   :  { %3859 = vmatprep.subr.bf16.mxu0 %v4107_v7 }
0x2a90   :  { %3861 = vmatpush3.bf16.msra.mxu0 %v4528_v11 }
0x2a91   :  { %3868 = vmatprep.subr.bf16.mxu0 %v4107_v7 }
0x2b5e   :  { %v2164_v26 = vpop.f32.mrb[20].mxu0 }
0x2b5f   :  { %v2168_v20 = vadd.f32 %v2164_v26, %v1644_v25  ;;  %v3636_v32 = vpop.f32.mrb[21].mxu0 }
0x2b61   :  { %v2169_v33 = vmul.f32 %v2168_v20, %v4283_v34 }
0x2b63   :  { %v3211_v35 = vmul.f32 -1.442695, %v2169_v33 }
0x2b65   :  { %4008 = vpow2.f32 %v3211_v35 }
0x2b6f   :  { %v4009_v36 = vpop.eup %4008 }
0x2b70   :  { %v2173_v37 = vadd.f32 1.0, %v4009_v36 }
0x2b72   :  { %4010 = vrcp.f32 %v2173_v37 }
0x2b7c   :  { %v4011_v4 = vpop.eup %4010 }
0x2b7d   :  { %v2176_v29 = vmul.f32 %v4011_v4, %v4283_v34  ;;  %v1659_v4 = vadd.f32 %v4495_v58, %v4554_v23 }
0x2b7f   :  { %v2177_v30 = vadd.f32 %v2176_v29, %v4287_v43 }
0x2b81   :  { %2180 = vrot.lane.b32.xlu0 %v2177_v30, %s4111_s2  ;;  %v2178_v57 = vmul.f32 %v2177_v30, %v2084_v14 }
0x2bf3   :  { %v2181_v38 = vpop.permute.xlu0 %2180 }
0x2bf4   :  { %v2183_v39 = vmul.f32 %v2181_v38, %v2177_v30 }
0x2bf6   :  { %2185 = vrot.lane.b32.xlu1 %v2183_v39, %s4112_s1 }
0x2c68   :  { %v2186_v22 = vpop.permute.xlu1 %2185 }
0x2c69   :  { %v2188_v40 = vadd.f32 %v2186_v22, %v2178_v57 }
0x2c6b   :  { %4012 = vtanh.f32 %v2188_v40 }
0x2c75   :  { %v4013_v41 = vpop.eup %4012 }
0x2c76   :  { %2191 = vrot.lane.b32.xlu0 %v4013_v41, %s4111_s2 }
0x2ce8   :  { %v2192_v42 = vpop.permute.xlu0 %2191 }
0x2ce9   :  { %v2194_v44 = vmul.f32 %v2192_v42, %v2177_v30 }
0x2ceb   :  { %2196 = vrot.lane.b32.xlu1 %v2194_v44, %s4112_s1 }
0x2d5d   :  { %v2197_v45 = vpop.permute.xlu1 %2196 }
0x2d5e   :  { %2199 = vst.msk [vmem:[#allocation3 + $0x20] sm:$0xff] %vm248_vm6, %v2197_v45  ;;  %3646 = vmatmul.mubr.msk.f32.vlgmr.msra.gmra.mrb[36].mxu1 %vm248_vm6, %v2197_v45 }
0x2d5f   :  { %3864 = vmatpush3.bf16.msra.mxu1 %v4518_v9  ;;  %3667 = vmatprep.mubr.msk.f32.mxu1 %vm4108_vm2, %v4109_v18 }
0x2d60   :  { %3865 = vmatprep.subr.bf16.mxu1 %v4107_v7 }
0x2d63   :  { %3867 = vmatpush3.bf16.msra.mxu1 %v4528_v11 }
0x2d64   :  { %3874 = vmatprep.subr.bf16.mxu1 %v4107_v7 }
0x2e31   :  { %v2268_v46 = vpop.f32.mrb[36].mxu1 }
0x2e32   :  { %v2272_v47 = vadd.f32 %v2268_v46, %v1649_v54  ;;  %v3647_v50 = vpop.f32.mrb[37].mxu1 }
0x2e34   :  { %v2273_v51 = vmul.f32 %v2272_v47, %v4283_v34 }
0x2e36   :  { %v3213_v19 = vmul.f32 -1.442695, %v2273_v51 }
0x2e38   :  { %4014 = vpow2.f32 %v3213_v19 }
0x2e42   :  { %v4015_v56 = vpop.eup %4014 }
0x2e43   :  { %v2277_v31 = vadd.f32 1.0, %v4015_v56 }
0x2e45   :  { %4016 = vrcp.f32 %v2277_v31  ;;  %v1664_v31 = vadd.f32 %v4554_v23, %v4501_v60 }
0x2e4f   :  { %v4017_v61 = vpop.eup %4016 }
0x2e50   :  { %v2280_v62 = vmul.f32 %v4017_v61, %v4283_v34 }
0x2e52   :  { %v2281_v63 = vadd.f32 %v2280_v62, %v4287_v43 }
0x2e54   :  { %2284 = vrot.lane.b32.xlu0 %v2281_v63, %s4111_s2  ;;  %v2282_v55 = vmul.f32 %v2281_v63, %v2188_v40 }
0x2ec6   :  { %v2285_v0 = vpop.permute.xlu0 %2284 }
0x2ec7   :  { %v2287_v1 = vmul.f32 %v2285_v0, %v2281_v63 }
0x2ec9   :  { %2289 = vrot.lane.b32.xlu1 %v2287_v1, %s4112_s1 }
0x2f3b   :  { %v2290_v2 = vpop.permute.xlu1 %2289 }
0x2f3c   :  { %v2292_v52 = vadd.f32 %v2290_v2, %v2282_v55 }
0x2f3e   :  { %4018 = vtanh.f32 %v2292_v52 }
0x2f48   :  { %v4019_v3 = vpop.eup %4018 }
0x2f49   :  { %2295 = vrot.lane.b32.xlu0 %v4019_v3, %s4111_s2 }
0x2fbb   :  { %v2296_v5 = vpop.permute.xlu0 %2295 }
0x2fbc   :  { %v2298_v8 = vmul.f32 %v2296_v5, %v2281_v63 }
0x2fbe   :  { %2300 = vrot.lane.b32.xlu1 %v2298_v8, %s4112_s1 }
0x3030   :  { %v2301_v6 = vpop.permute.xlu1 %2300 }
0x3031   :  { %2303 = vst.msk [vmem:[#allocation3 + $0x28] sm:$0xff] %vm248_vm6, %v2301_v6  ;;  %3657 = vmatmul.mubr.msk.f32.vlgmr.msra.gmra.mrb[22].mxu0 %vm248_vm6, %v2301_v6 }
0x3032   :  { %3870 = vmatpush3.bf16.msra.mxu0 %v4518_v9  ;;  %3678 = vmatprep.mubr.msk.f32.mxu0 %vm4108_vm2, %v4109_v18 }
0x3033   :  { %3871 = vmatprep.subr.bf16.mxu0 %v4107_v7 }
0x3036   :  { %3873 = vmatpush3.bf16.msra.mxu0 %v4528_v11 }
0x3037   :  { %3880 = vmatprep.subr.bf16.mxu0 %v4107_v7 }
0x3104   :  { %v2372_v10 = vpop.f32.mrb[22].mxu0 }
0x3105   :  { %v2376_v12 = vadd.f32 %v2372_v10, %v1654_v24  ;;  %v3658_v13 = vpop.f32.mrb[23].mxu0 }
0x3107   :  { %v2377_v53 = vmul.f32 %v2376_v12, %v4283_v34 }
0x3109   :  { %v3215_v27 = vmul.f32 -1.442695, %v2377_v53 }
0x310b   :  { %4020 = vpow2.f32 %v3215_v27 }
0x3115   :  { %v4021_v14 = vpop.eup %4020 }
0x3116   :  { %v2381_v15 = vadd.f32 1.0, %v4021_v14  ;;  %v1669_v14 = vadd.f32 %v4499_v59, %v4554_v23 }
0x3118   :  { %4022 = vrcp.f32 %v2381_v15 }
0x3122   :  { %v4023_v16 = vpop.eup %4022 }
0x3123   :  { %v2384_v17 = vmul.f32 %v4023_v16, %v4283_v34 }
0x3125   :  { %v2385_v21 = vadd.f32 %v2384_v17, %v4287_v43 }
0x3127   :  { %2388 = vrot.lane.b32.xlu0 %v2385_v21, %s4111_s2  ;;  %v2386_v28 = vmul.f32 %v2385_v21, %v2292_v52 }
0x3199   :  { %v2389_v25 = vpop.permute.xlu0 %2388 }
0x319a   :  { %v2391_v26 = vmul.f32 %v2389_v25, %v2385_v21 }
0x319c   :  { %2393 = vrot.lane.b32.xlu1 %v2391_v26, %s4112_s1 }
0x320e   :  { %v2394_v20 = vpop.permute.xlu1 %2393 }
0x320f   :  { %v2396_v32 = vadd.f32 %v2394_v20, %v2386_v28 }
0x3211   :  { %4024 = vtanh.f32 %v2396_v32 }
0x321b   :  { %v4025_v33 = vpop.eup %4024 }
0x321c   :  { %2399 = vrot.lane.b32.xlu0 %v4025_v33, %s4111_s2 }
0x328e   :  { %v2400_v35 = vpop.permute.xlu0 %2399 }
0x328f   :  { %v2402_v36 = vmul.f32 %v2400_v35, %v2385_v21  ;;  %v2940_v35 = vld [vmem:[#allocation4] sm:$0xff] }
0x3291   :  { %2404 = vrot.lane.b32.xlu1 %v2402_v36, %s4112_s1  ;;  %v2941_v36 = vld [vmem:[#allocation4 + $0x8] sm:$0xff] }
0x3303   :  { %v2405_v37 = vpop.permute.xlu1 %2404 }
0x3304   :  { %2407 = vst.msk [vmem:[#allocation3 + $0x30] sm:$0xff] %vm248_vm6, %v2405_v37  ;;  %3668 = vmatmul.mubr.msk.f32.vlgmr.msra.gmra.mrb[38].mxu1 %vm248_vm6, %v2405_v37  ;;  %v3892_v37 = vpack.c.bf16 %v2941_v36, %v2940_v35 }
0x3305   :  { %3876 = vmatpush3.bf16.msra.mxu1 %v4518_v9  ;;  %3689 = vmatprep.mubr.msk.f32.mxu1 %vm4108_vm2, %v4109_v18 }
0x3306   :  { %3877 = vmatprep.subr.bf16.mxu1 %v4107_v7 }
0x3309   :  { %3879 = vmatpush3.bf16.msra.mxu1 %v4528_v11 }
0x330a   :  { %3886 = vmatprep.subr.bf16.mxu1 %v4107_v7 }
0x33d7   :  { %v2476_v29 = vpop.f32.mrb[38].mxu1 }
0x33d8   :  { %v2480_v30 = vadd.f32 %v2476_v29, %v1659_v4  ;;  %v3669_v38 = vpop.f32.mrb[39].mxu1 }
0x33d9   :  { %v2942_v38 = vld [vmem:[#allocation4 + $0x10] sm:$0xff] }
0x33da   :  { %v2481_v39 = vmul.f32 %v2480_v30, %v4283_v34 }
0x33dc   :  { %v3217_v57 = vmul.f32 -1.442695, %v2481_v39  ;;  %v2943_v39 = vld [vmem:[#allocation4 + $0x18] sm:$0xff] }
0x33de   :  { %4026 = vpow2.f32 %v3217_v57  ;;  %v3896_v57 = vpack.c.bf16 %v2943_v39, %v2942_v38 }
0x33e8   :  { %v4027_v22 = vpop.eup %4026 }
0x33e9   :  { %v2485_v40 = vadd.f32 1.0, %v4027_v22 }
0x33eb   :  { %4028 = vrcp.f32 %v2485_v40  ;;  %v2928_v40 = vld [vmem:[#allocation3] sm:$0xff] }
0x33f5   :  { %v4029_v41 = vpop.eup %4028 }
0x33f6   :  { %v2488_v42 = vmul.f32 %v4029_v41, %v4283_v34  ;;  %v2929_v41 = vld [vmem:[#allocation3 + $0x8] sm:$0xff] }
0x33f8   :  { %v2489_v44 = vadd.f32 %v2488_v42, %v4287_v43  ;;  %v2930_v42 = vld [vmem:[#allocation3 + $0x10] sm:$0xff] }
0x33fa   :  { %2492 = vrot.lane.b32.xlu0 %v2489_v44, %s4111_s2  ;;  %v2490_v58 = vmul.f32 %v2489_v44, %v2396_v32 }
0x346c   :  { %v2493_v45 = vpop.permute.xlu0 %2492 }
0x346d   :  { %v2495_v54 = vmul.f32 %v2493_v45, %v2489_v44  ;;  %v2932_v45 = vld [vmem:[#allocation3 + $0x20] sm:$0xff] }
0x346f   :  { %2497 = vrot.lane.b32.xlu1 %v2495_v54, %s4112_s1  ;;  %v2933_v54 = vld [vmem:[#allocation3 + $0x28] sm:$0xff] }
0x34e1   :  { %v2498_v46 = vpop.permute.xlu1 %2497 }
0x34e2   :  { %v2500_v47 = vadd.f32 %v2498_v46, %v2490_v58  ;;  %v2934_v58 = vld [vmem:[#allocation3 + $0x30] sm:$0xff] }
0x34e4   :  { %4030 = vtanh.f32 %v2500_v47 }
0x34ee   :  { %v4031_v50 = vpop.eup %4030 }
0x34ef   :  { %2503 = vrot.lane.b32.xlu0 %v4031_v50, %s4111_s2 }
0x3561   :  { %v2504_v51 = vpop.permute.xlu0 %2503 }
0x3562   :  { %v2506_v19 = vmul.f32 %v2504_v51, %v2489_v44  ;;  %v2931_v44 = vld [vmem:[#allocation3 + $0x18] sm:$0xff]  ;;  %v1674_v51 = vadd.f32 %v4554_v23, %v4610_v49 }
0x3564   :  { %2508 = vrot.lane.b32.xlu1 %v2506_v19, %s4112_s1 }
0x35d6   :  { %v2509_v56 = vpop.permute.xlu1 %2508 }
0x35d7   :  { %2511 = vst.msk [vmem:[#allocation3 + $0x38] sm:$0xff] %vm248_vm6, %v2509_v56  ;;  %3679 = vmatmul.mubr.msk.f32.vlgmr.msra.gmra.mrb[24].mxu0 %vm248_vm6, %v2509_v56 }
0x35d8   :  { %3882 = vmatpush3.bf16.msra.mxu0 %v4518_v9  ;;  %3700 = vmatprep.mubr.msk.f32.mxu0 %vm4108_vm2, %v4109_v18 }
0x35d9   :  { %3883 = vmatprep.subr.bf16.mxu0 %v4107_v7 }
0x35dc   :  { %3885 = vmatpush3.bf16.msra.mxu0 %v4528_v11 }
0x35dd   :  { %3893 = vmatprep.subr.bf16.mxu0 %v3892_v37 }
0x35de   :  { %v2935_v46 = vld [vmem:[#allocation3 + $0x38] sm:$0xff] }
0x36aa   :  { %v2580_v61 = vpop.f32.mrb[24].mxu0 }
0x36ab   :  { %v2584_v62 = vadd.f32 %v2580_v61, %v1664_v31  ;;  %v3680_v63 = vpop.f32.mrb[25].mxu0 }
0x36ac   :  { %v4752_v63 = vld [vmem:[%s4810_s8] ss:$0 sm:$0xff]  ;;  %s4113_s8 = smov [#allocation7]  }
0x36ad   :  { %v2585_v0 = vmul.f32 %v2584_v62, %v4283_v34  ;;  %s3141_s10 = sshll.u32 %s4113_s8, 4  ;;  %s3142_s10 = int_to_ptr.vmem [resolvable:$true] %s3141_s10 }
0x36ae   :  { %p4083_p9 = scmp.lt.s32.totalorder %s3142_s10, %s3142_s10 }
0x36af   :  { %v3219_v1 = vmul.f32 -1.442695, %v2585_v0 }
0x36b1   :  { %4032 = vpow2.f32 %v3219_v1 }
0x36bb   :  { %v4033_v55 = vpop.eup %4032 }
0x36bc   :  { %v2589_v2 = vadd.f32 1.0, %v4033_v55 }
0x36be   :  { %4034 = vrcp.f32 %v2589_v2 }
0x36c8   :  { %v4035_v52 = vpop.eup %4034 }
0x36c9   :  { %v2592_v3 = vmul.f32 %v4035_v52, %v4283_v34 }
0x36cb   :  { %v2593_v5 = vadd.f32 %v2592_v3, %v4287_v43 }
0x36cd   :  { %2596 = vrot.lane.b32.xlu0 %v2593_v5, %s4111_s2  ;;  %v2594_v60 = vmul.f32 %v2593_v5, %v2500_v47 }
0x373f   :  { %v2597_v8 = vpop.permute.xlu0 %2596 }
0x3740   :  { %v2599_v6 = vmul.f32 %v2597_v8, %v2593_v5 }
0x3742   :  { %2601 = vrot.lane.b32.xlu1 %v2599_v6, %s4112_s1 }
0x37b4   :  { %v2602_v24 = vpop.permute.xlu1 %2601 }
0x37b5   :  { %v2604_v10 = vadd.f32 %v2602_v24, %v2594_v60 }
0x37b7   :  { %4036 = vtanh.f32 %v2604_v10 }
0x37c1   :  { %v4037_v12 = vpop.eup %4036 }
0x37c2   :  { %2607 = vrot.lane.b32.xlu0 %v4037_v12, %s4111_s2 }
0x3834   :  { %v2608_v13 = vpop.permute.xlu0 %2607 }
0x3835   :  { %v2610_v53 = vmul.f32 %v2608_v13, %v2593_v5 }
0x3837   :  { %2612 = vrot.lane.b32.xlu1 %v2610_v53, %s4112_s1 }
0x38a9   :  { %v2613_v27 = vpop.permute.xlu1 %2612 }
0x38aa   :  { %2615 = vst.msk [vmem:[#allocation3 + $0x40] sm:$0xff] %vm248_vm6, %v2613_v27  ;;  %3690 = vmatmul.mubr.msk.f32.vlgmr.msra.gmra.mrb[40].mxu1 %vm248_vm6, %v2613_v27 }
0x38ab   :  { %3888 = vmatpush3.bf16.msra.mxu1 %v4518_v9  ;;  %3711 = vmatprep.mubr.msk.f32.mxu1 %vm4108_vm2, %v4109_v18 }
0x38ac   :  { %3889 = vmatprep.subr.bf16.mxu1 %v4107_v7 }
0x38af   :  { %3891 = vmatpush3.bf16.msra.mxu1 %v4528_v11 }
0x38b1   :  { %v2936_v47 = vld [vmem:[#allocation3 + $0x40] sm:$0xff] }
0x397d   :  { %v2684_v15 = vpop.f32.mrb[40].mxu1 }
0x397e   :  { %v2688_v16 = vadd.f32 %v2684_v15, %v1669_v14  ;;  %v3691_v17 = vpop.f32.mrb[41].mxu1 }
0x3980   :  { %v2689_v21 = vmul.f32 %v2688_v16, %v4283_v34 }
0x3982   :  { %v3221_v25 = vmul.f32 -1.442695, %v2689_v21 }
0x3984   :  { %4038 = vpow2.f32 %v3221_v25 }
0x398e   :  { %v4039_v26 = vpop.eup %4038 }
0x398f   :  { %v2693_v28 = vadd.f32 1.0, %v4039_v26 }
0x3991   :  { %4040 = vrcp.f32 %v2693_v28 }
0x399b   :  { %v4041_v9 = vpop.eup %4040 }
0x399c   :  { %v2696_v18 = vmul.f32 %v4041_v9, %v4283_v34 }
0x399e   :  { %v2697_v7 = vadd.f32 %v2696_v18, %v4287_v43 }
0x39a0   :  { %2700 = vrot.lane.b32.xlu0 %v2697_v7, %s4111_s2  ;;  %v2698_v59 = vmul.f32 %v2697_v7, %v2604_v10 }
0x3a12   :  { %v2701_v11 = vpop.permute.xlu0 %2700 }
0x3a13   :  { %v2703_v20 = vmul.f32 %v2701_v11, %v2697_v7 }
0x3a15   :  { %2705 = vrot.lane.b32.xlu1 %v2703_v20, %s4112_s1 }
0x3a87   :  { %v2706_v32 = vpop.permute.xlu1 %2705 }
0x3a88   :  { %v4729_v33 = vadd.f32 %v2706_v32, %v2698_v59 }
0x3a8a   :  { %4042 = vtanh.f32 %v4729_v33 }
0x3a94   :  { %v4043_v4 = vpop.eup %4042 }
0x3a95   :  { %2711 = vrot.lane.b32.xlu0 %v4043_v4, %s4111_s2 }
0x3b07   :  { %v2712_v29 = vpop.permute.xlu0 %2711 }
0x3b08   :  { %v2714_v30 = vmul.f32 %v2712_v29, %v2697_v7 }
0x3b0a   :  { %2716 = vrot.lane.b32.xlu1 %v2714_v30, %s4112_s1 }
0x3b7c   :  { %v2717_v22 = vpop.permute.xlu1 %2716 }
0x3b7d   :  { %2719 = vst.msk [vmem:[#allocation3 + $0x48] sm:$0xff] %vm248_vm6, %v2717_v22  ;;  %3701 = vmatmul.mubr.msk.f32.vlgmr.msra.gmra.mrb[26].mxu0 %vm248_vm6, %v2717_v22 }
0x3b7e   :  { %3895 = vmatpush3.bf16.msra.mxu0 %v3892_v37  ;;  %3722 = vmatprep.mubr.msk.f32.mxu0 %vm248_vm6, %v2928_v40 }
0x3b7f   :  { %3897 = vmatprep.subr.bf16.mxu0 %v3896_v57 }
0x3b82   :  { %3899 = vmatpush3.bf16.msra.mxu0 %v3896_v57 }
0x3b84   :  { %v2937_v50 = vld [vmem:[#allocation3 + $0x48] sm:$0xff] }
0x3b85   :  { %3723 = vmatmul.mubr.msk.f32.vlgmr.msra.gmra.mrb[28].mxu0 %vm248_vm6, %v2929_v41 }
0x3b86   :  { %3725 = vmatprep.mubr.msk.f32.mxu0 %vm248_vm6, %v2930_v42 }
0x3b89   :  { %3726 = vmatmul.mubr.msk.f32.gmra.mrb[30].mxu0 %vm248_vm6, %v2931_v44 }
0x3b8a   :  { %3728 = vmatprep.mubr.msk.f32.mxu0 %vm248_vm6, %v2932_v45 }
0x3b8d   :  { %3729 = vmatmul.mubr.msk.f32.gmra.mrb[32].mxu0 %vm248_vm6, %v2933_v54 }
0x3b8e   :  { %3731 = vmatprep.mubr.msk.f32.mxu0 %vm248_vm6, %v2934_v58 }
0x3b91   :  { %3732 = vmatmul.mubr.msk.f32.gmra.mrb[34].mxu0 %vm248_vm6, %v2935_v46 }
0x3b92   :  { %3734 = vmatprep.mubr.msk.f32.mxu0 %vm248_vm6, %v2936_v47 }
0x3b95   :  { %3735 = vmatmul.mubr.msk.f32.gmra.mrb[36].mxu0 %vm248_vm6, %v2937_v50 }
0x3c50   :  { %v2788_v19 = vpop.f32.mrb[26].mxu0 }
0x3c51   :  { %v2792_v56 = vadd.f32 %v2788_v19, %v1674_v51  ;;  %v3702_v31 = vpop.f32.mrb[27].mxu0 }
0x3c53   :  { %v2793_v61 = vmul.f32 %v2792_v56, %v4283_v34 }
0x3c55   :  { %v3223_v62 = vmul.f32 -1.442695, %v2793_v61 }
0x3c57   :  { %4044 = vpow2.f32 %v3223_v62 }
0x3c58   :  { %v3724_v0 = vpop.f32.mrb[28].mxu0 }
0x3c59   :  { %v3059_v1 = vadd.f32 %v3724_v0, %v4752_v63  ;;  %v3053_v55 = vpop.f32.mrb[29].mxu0 }
0x3c5a   :  { %v3054_v2 = vadd.f32 %v4752_v63, %v3053_v55 }
0x3c5b   :  { %v3113_v52 = vmax.f32 %v3059_v1, 0.0 }
0x3c5c   :  { %v3112_v49 = vmax.f32 %v3054_v2, 0.0  ;;  %v3727_v3 = vpop.f32.mrb[30].mxu0 }
0x3c5d   :  { %3125 = vst [vmem:[#allocation7 + $0x8] sm:$0xff] %v3113_v52  ;;  %v3069_v5 = vadd.f32 %v3727_v3, %v4752_v63  ;;  %v3063_v8 = vpop.f32.mrb[31].mxu0 }
0x3c5e   :  { %3124 = vst [vmem:[#allocation7] sm:$0xff] %v3112_v49  ;;  %v3064_v6 = vadd.f32 %v4752_v63, %v3063_v8 }
0x3c5f   :  { %v3115_v60 = vmax.f32 %v3069_v5, 0.0 }
0x3c60   :  { %v3114_v24 = vmax.f32 %v3064_v6, 0.0  ;;  %v3730_v10 = vpop.f32.mrb[32].mxu0 }
0x3c61   :  { %v4045_v12 = vpop.eup %4044  ;;  %3127 = vst [vmem:[#allocation7 + $0x18] sm:$0xff] %v3115_v60  ;;  %v3079_v13 = vadd.f32 %v3730_v10, %v4752_v63  ;;  %v3073_v53 = vpop.f32.mrb[33].mxu0 }
0x3c62   :  { %v2797_v27 = vadd.f32 1.0, %v4045_v12  ;;  %3126 = vst [vmem:[#allocation7 + $0x10] sm:$0xff] %v3114_v24  ;;  %v3074_v14 = vadd.f32 %v4752_v63, %v3073_v53 }
0x3c63   :  { %v3117_v15 = vmax.f32 %v3079_v13, 0.0 }
0x3c64   :  { %4046 = vrcp.f32 %v2797_v27  ;;  %v3116_v16 = vmax.f32 %v3074_v14, 0.0  ;;  %v3733_v17 = vpop.f32.mrb[34].mxu0 }
0x3c65   :  { %3129 = vst [vmem:[#allocation7 + $0x28] sm:$0xff] %v3117_v15  ;;  %v3089_v21 = vadd.f32 %v3733_v17, %v4752_v63  ;;  %v3083_v25 = vpop.f32.mrb[35].mxu0 }
0x3c66   :  { %3128 = vst [vmem:[#allocation7 + $0x20] sm:$0xff] %v3116_v16  ;;  %v3084_v26 = vadd.f32 %v4752_v63, %v3083_v25 }
0x3c67   :  { %v3119_v28 = vmax.f32 %v3089_v21, 0.0 }
0x3c68   :  { %v3118_v9 = vmax.f32 %v3084_v26, 0.0  ;;  %v3736_v18 = vpop.f32.mrb[36].mxu0 }
0x3c69   :  { %3131 = vst [vmem:[#allocation7 + $0x38] sm:$0xff] %v3119_v28  ;;  %v3099_v7 = vadd.f32 %v3736_v18, %v4752_v63  ;;  %v3093_v11 = vpop.f32.mrb[37].mxu0 }
0x3c6a   :  { %3130 = vst [vmem:[#allocation7 + $0x30] sm:$0xff] %v3118_v9  ;;  %v3094_v20 = vadd.f32 %v4752_v63, %v3093_v11 }
0x3c6b   :  { %v3121_v59 = vmax.f32 %v3099_v7, 0.0 }
0x3c6c   :  { %v3120_v32 = vmax.f32 %v3094_v20, 0.0 }
0x3c6d   :  { %3133 = vst [vmem:[#allocation7 + $0x48] sm:$0xff] %v3121_v59 }
0x3c6e   :  { %v4047_v35 = vpop.eup %4046  ;;  %3132 = vst [vmem:[#allocation7 + $0x40] sm:$0xff] %v3120_v32 }
0x3c6f   :  { %v2800_v36 = vmul.f32 %v4047_v35, %v4283_v34 }
0x3c71   :  { %v2801_v37 = vadd.f32 %v2800_v36, %v4287_v43 }
0x3c73   :  { %2804 = vrot.lane.b32.xlu0 %v2801_v37, %s4111_s2  ;;  %v2802_v30 = vmul.f32 %v2801_v37, %v4729_v33  ;;  %v1679_v33 = vadd.f32 %v4608_v48, %v4554_v23 }
0x3ce5   :  { %v2805_v4 = vpop.permute.xlu0 %2804 }
0x3ce6   :  { %v2807_v29 = vmul.f32 %v2805_v4, %v2801_v37 }
0x3ce8   :  { %2809 = vrot.lane.b32.xlu1 %v2807_v29, %s4112_s1 }
0x3d5a   :  { %v2810_v38 = vpop.permute.xlu1 %2809 }
0x3d5b   :  { %v2812_v39 = vadd.f32 %v2810_v38, %v2802_v30 }
0x3d5d   :  { %4048 = vtanh.f32 %v2812_v39 }
0x3d67   :  { %v4049_v57 = vpop.eup %4048 }
0x3d68   :  { %2815 = vrot.lane.b32.xlu0 %v4049_v57, %s4111_s2 }
0x3dda   :  { %v2816_v22 = vpop.permute.xlu0 %2815 }
0x3ddb   :  { %v2818_v40 = vmul.f32 %v2816_v22, %v2801_v37 }
0x3ddd   :  { %2820 = vrot.lane.b32.xlu1 %v2818_v40, %s4112_s1 }
0x3e4f   :  { %v2821_v41 = vpop.permute.xlu1 %2820 }
0x3e50   :  { %2823 = vst.msk [vmem:[#allocation3 + $0x50] sm:$0xff] %vm248_vm6, %v2821_v41  ;;  %3712 = vmatmul.mubr.msk.f32.vlgmr.msra.gmra.mrb[42].mxu1 %vm248_vm6, %v2821_v41 }
0x3e57   :  { %v2938_v42 = vld [vmem:[#allocation3 + $0x50] sm:$0xff] }
0x3e58   :  { %3737 = vmatprep.mubr.msk.f32.mxu0 %vm248_vm6, %v2938_v42 }
0x3f23   :  { %v2892_v44 = vpop.f32.mrb[42].mxu1 }
0x3f24   :  { %v2896_v45 = vadd.f32 %v2892_v44, %v1679_v33  ;;  %v3713_v54 = vpop.f32.mrb[43].mxu1 }
0x3f26   :  { %v2897_v58 = vmul.f32 %v2896_v45, %v4283_v34 }
0x3f28   :  { %v3225_v46 = vmul.f32 -1.442695, %v2897_v58 }
0x3f2a   :  { %4050 = vpow2.f32 %v3225_v46 }
0x3f34   :  { %v4051_v47 = vpop.eup %4050 }
0x3f35   :  { %v2901_v50 = vadd.f32 1.0, %v4051_v47 }
0x3f37   :  { %4052 = vrcp.f32 %v2901_v50 }
0x3f41   :  { %v4053_v51 = vpop.eup %4052 }
0x3f42   :  { %v2904_v19 = vmul.f32 %v4053_v51, %v4283_v34 }
0x3f44   :  { %v2905_v56 = vadd.f32 %v2904_v19, %v4287_v43 }
0x3f46   :  { %2908 = vrot.lane.b32.xlu0 %v2905_v56, %s4111_s2  ;;  %v2906_v23 = vmul.f32 %v2905_v56, %v2812_v39 }
0x3fb8   :  { %v2909_v31 = vpop.permute.xlu0 %2908 }
0x3fb9   :  { %v2911_v61 = vmul.f32 %v2909_v31, %v2905_v56 }
0x3fbb   :  { %2913 = vrot.lane.b32.xlu1 %v2911_v61, %s4112_s1 }
0x402d   :  { %v2914_v48 = vpop.permute.xlu1 %2913 }
0x402e   :  { %v2916_v62 = vadd.f32 %v2914_v48, %v2906_v23 }
0x4030   :  { %4054 = vtanh.f32 %v2916_v62 }
0x403a   :  { %v4055_v0 = vpop.eup %4054 }
0x403b   :  { %2919 = vrot.lane.b32.xlu0 %v4055_v0, %s4111_s2  ;;  %s4078_s2 = scalar_lea.vmem %s3142_s10, 1536 }
0x403c   :  { %p4079_p8 = scmp.ne.s32.totalorder %s3142_s10, %s4078_s2  ;;  %p4084_p10 = scmp.lt.s32.totalorder %s4078_s2, %s4078_s2 }
0x403e   :  { %p4085_p11 = por %p4084_p10, %p4083_p9 }
0x4040   :  { %p4086_p12 = pnand %p4085_p11, %p4079_p8 }
0x40ad   :  { %v2920_v1 = vpop.permute.xlu0 %2919 }
0x40ae   :  { %v2922_v55 = vmul.f32 %v2920_v1, %v2905_v56 }
0x40b0   :  { %2924 = vrot.lane.b32.xlu1 %v2922_v55, %s4112_s1 }
0x4122   :  { %v2925_v34 = vpop.permute.xlu1 %2924 }
0x4123   :  { %2927 = vst.msk [vmem:[#allocation3 + $0x58] sm:$0xff] %vm248_vm6, %v2925_v34 }
0x412a   :  { %v2939_v43 = vld [vmem:[#allocation3 + $0x58] sm:$0xff] }
0x412b   :  { %3738 = vmatmul.mubr.msk.f32.gmra.mrb[38].mxu0 %vm248_vm6, %v2939_v43 }
0x41fe   :  { %v3739_v2 = vpop.f32.mrb[38].mxu0 }
0x41ff   :  { %v3109_v52 = vadd.f32 %v3739_v2, %v4752_v63  ;;  %v3103_v49 = vpop.f32.mrb[39].mxu0 }
0x4200   :  { %v3104_v3 = vadd.f32 %v4752_v63, %v3103_v49 }
0x4201   :  { %v3123_v5 = vmax.f32 %v3109_v52, 0.0 }
0x4202   :  { %v3122_v8 = vmax.f32 %v3104_v3, 0.0 }
0x4203   :  { %3135 = vst [vmem:[#allocation7 + $0x58] sm:$0xff] %v3123_v5 }
0x4204   :  { %3134 = vst [vmem:[#allocation7 + $0x50] sm:$0xff] %v3122_v8 }
0x4205   :  { %4089 = shalt.err (!%p4086_p12)
}
0x4206   :  { %s4090_s12 = scalar_lea.hbm %s4811_s9, 1536 }
0x4207   :  { %p4091_p13 = scmp.ne.s32.totalorder %s4811_s9, %s4090_s12  ;;  %p4094_p0 = scmp.lt.u32.totalorder %s4090_s12, %s4811_s9 }
0x4209   :  { %p4096_p1 = pnand %p4094_p0, %p4091_p13 }
0x420b   :  { %4099 = shalt.err (!%p4096_p1)
}
0x420c   :  { %3147 = dma.vmem_to_hbm [thread:$0]  %s3142_s10, 1536, %s4811_s9, [#allocation6], %s4105_s19, %s4105_s19, %s4106_s20  }
0x420d   :  { %4102 = dma.done.wait [#allocation6], 1536  }
0x420e   :  { %4103 = vsyncadd [#allocation6], 4294965760 }
0x420f   :  { %3151 = vsyncpa [#allocation5], 1 }
0x4210   :  { %3152 = vsyncpa [#allocation6], 1 }

</bundles_post_ra>
